<compile_context>
chip_gen: v7x
topology: tpu7x:2x2x1
jax: 0.10.0
libtpu: 0.0.40
codegen_flags: <defaults>
</compile_context>

<pallas_src>
import math

import jax
import jax.numpy as jnp
import numpy as np
from jax.experimental import pallas as pl
from jax.experimental.pallas import tpu as pltpu

_HEAD_ROWS = 24  # 16 side_prep rows + 1 fused score_dsn row, padded to 8k


def _round_up(v, m):
    return ((v + m - 1) // m) * m


# ----------------------------------------------------------------------------
# Fused Pallas kernel
# ----------------------------------------------------------------------------
def _fused_kernel(x_ref, mask_ref, wh_ref, bh_ref, w2_ref,      # inputs
                  so_ref, ph_ref,                               # outputs
                  xmf_ref, rhs1_ref, pad_ref, rhs2_ref):        # VMEM scratch
    """All stages for one batch element.

    x_ref   : (1, C, T, H, W)  raw input block (native layout)
    mask_ref: (1, mo1)         0/1 mask zeroing row-seam / lane-pad columns
    wh_ref  : (24, 9*Cp)       fused head weight (side_prep + folded score_dsn)
    bh_ref  : (24, 1)          fused head bias
    w2_ref  : (Pout_pad, 4*24) packed weights for BOTH transposed convs
    so_ref  : (1, 1, mo1)      side_out_tmp on the flattened stage-1 grid
    ph_ref  : (1, Pout_pad, mo2) all sub-pixel phases of both deconvs
    """
    _, C, T, H, W = x_ref.shape
    Cp = xmf_ref.shape[0]
    Wp = W + 2                              # padded row width (same for both stages)
    mo1 = rhs1_ref.shape[1]                 # lane-padded stage-1 output width
    mo2 = rhs2_ref.shape[1]                 # lane-padded stage-2 output width
    pad_off = _round_up(Wp + 1, 128)        # lane-aligned start of head slab

    # ---- temporal mean (AvgPool3d((T,1,1)) + squeeze), fp32 accumulation ----
    xall = x_ref[0].astype(jnp.float32)     # (C, T, H, W)
    acc = xall[:, 0]
    for t in range(1, T):
        acc = acc + xall[:, t]
    xm = acc * (1.0 / T)                    # (C, H, W)
    if Cp > C:                              # channel pad to sublane multiple
        xm = jnp.concatenate(
            [xm, jnp.zeros((Cp - C, H, W), jnp.float32)], axis=0)

    # ---- zero-padded, spatially flattened mean plane built in VMEM ----------
    xmf_ref[...] = jnp.zeros_like(xmf_ref)
    for h in range(H):
        base = (h + 1) * Wp + 1
        xmf_ref[:, base:base + W] = xm[:, h, :]

    # ---- side_prep 3x3 + folded score_dsn as ONE matmul ---------------------
    # in-VMEM im2col: 9 shifted slabs -> (9*Cp, mo1) RHS, single K = 9*Cp dot.
    for idx in range(9):
        kh, kw = idx // 3, idx % 3
        off = kh * Wp + kw
        rhs1_ref[idx * Cp:(idx + 1) * Cp, :] = xmf_ref[:, off:off + mo1]
    head = jnp.dot(wh_ref[...], rhs1_ref[...],
                   preferred_element_type=jnp.float32) + bh_ref[...]
    head = head * mask_ref[...]             # zero row-seam / lane-pad garbage

    # row 16 of the fused weight == score_dsn(side_prep(x)) == side_out_tmp
    so_ref[0] = head[16:17, :].astype(so_ref.dtype)

    # ---- stage-2 padded plane: masked head shifted by one padded (row,col) --
    pad_ref[...] = jnp.zeros_like(pad_ref)
    pad_ref[:, pad_off:pad_off + mo1] = head

    # ---- BOTH transposed convs (sub-pixel phases) as ONE matmul -------------
    shift = pad_off - (Wp + 1)
    for idx in range(4):
        m, n = idx // 2, idx % 2
        off = shift + m * Wp + n
        rhs2_ref[idx * _HEAD_ROWS:(idx + 1) * _HEAD_ROWS, :] = \
            pad_ref[:, off:off + mo2]
    ph = jnp.dot(w2_ref[...], rhs2_ref[...], preferred_element_type=jnp.float32)
    ph_ref[0] = ph.astype(ph_ref.dtype)


# ----------------------------------------------------------------------------
# pallas_call wrapper
# ----------------------------------------------------------------------------
def _fused_forward(x, mask1, wh, bh, w2, *, Cp, pout_pad,
                   mo1_pad, mo2_pad, L1, L2):
    N, C, T, H, W = x.shape
    return pl.pallas_call(
        _fused_kernel,
        out_shape=(jax.ShapeDtypeStruct((N, 1, mo1_pad), x.dtype),
                   jax.ShapeDtypeStruct((N, pout_pad, mo2_pad), x.dtype)),
        grid=(N,),
        in_specs=[
            pl.BlockSpec((1, C, T, H, W), lambda n: (n, 0, 0, 0, 0)),
            pl.BlockSpec(mask1.shape, lambda n: (0, 0)),
            pl.BlockSpec(wh.shape, lambda n: (0, 0)),
            pl.BlockSpec(bh.shape, lambda n: (0, 0)),
            pl.BlockSpec(w2.shape, lambda n: (0, 0)),
        ],
        out_specs=(pl.BlockSpec((1, 1, mo1_pad), lambda n: (n, 0, 0)),
                   pl.BlockSpec((1, pout_pad, mo2_pad), lambda n: (n, 0, 0))),
        scratch_shapes=[
            pltpu.VMEM((Cp, L1), jnp.float32),               # padded mean plane
            pltpu.VMEM((9 * Cp, mo1_pad), jnp.float32),      # stage-1 im2col RHS
            pltpu.VMEM((_HEAD_ROWS, L2), jnp.float32),       # stage-2 padded plane
            pltpu.VMEM((4 * _HEAD_ROWS, mo2_pad), jnp.float32),  # stage-2 RHS
        ],
        compiler_params=pltpu.CompilerParams(
            dimension_semantics=("parallel",),
            vmem_limit_bytes=48 * 1024 * 1024),
    )(x, mask1, wh, bh, w2)


# ----------------------------------------------------------------------------
# Weight packing / glue
# ----------------------------------------------------------------------------
def _pack_conv_transpose_weights(wt, stride):
    """PyTorch ConvTranspose2d weight (Cin, Cout, K, K), K == 2*stride,
    -> (s*s*Cout, 4*Cin) per-phase 2x2 correlation weights.

    Row    = (py*s + px)*Cout + co          (output phase, out channel)
    Column = (m*2 + n)*Cin + ci             (2x2 tap on padded input, in chan)
    """
    cin, cout, K, _ = wt.shape
    assert K == 2 * stride
    wr = wt.reshape(cin, cout, 2, stride, 2, stride)   # [ci, co, mm, py, nn, px]
    wf = wr[:, :, ::-1, :, ::-1, :]                    # [ci, co, m,  py, n,  px]
    a = jnp.transpose(wf, (3, 5, 1, 2, 4, 0))          # [py, px, co, m, n, ci]
    return a.reshape(stride * stride * cout, 4 * cin)


def center_crop_nchw(x, height, width):
    """PyTorch center_crop (F.pad with possibly-negative pads), NCHW."""
    H, W = x.shape[2], x.shape[3]
    pad_t = int(math.ceil((height - H) / 2.0))
    pad_b = int(math.floor((height - H) / 2.0))
    pad_l = int(math.ceil((width - W) / 2.0))
    pad_r = int(math.floor((width - W) / 2.0))
    return jax.lax.pad(
        x, jnp.array(0, x.dtype),
        [(0, 0, 0), (0, 0, 0), (pad_t, pad_b, 0), (pad_l, pad_r, 0)])


# ----------------------------------------------------------------------------
# Module
# ----------------------------------------------------------------------------
class DsamScoreDsnPallas:
    def __init__(self, prev_layer, prev_nfilters, prev_nsamples, key):
        i = prev_layer
        self.stride = 2 ** i
        self.ksize = 2 ** (1 + i)
        self.cin = prev_nfilters
        self.nsamples = prev_nsamples
        k1, k2, k3, k4, k5, k6 = jax.random.split(key, 6)

        # Parameters kept in PyTorch layouts (used by the reference check).
        self.w_side_prep = 0.1 * jax.random.normal(
            k1, (16, prev_nfilters, 3, 3), jnp.float32)          # OIHW
        self.b_side_prep = 0.1 * jax.random.normal(k2, (16,), jnp.float32)
        self.w_score_dsn = 0.1 * jax.random.normal(
            k3, (1, 16, 1, 1), jnp.float32)                      # OIHW
        self.b_score_dsn = 0.1 * jax.random.normal(k4, (1,), jnp.float32)
        self.w_upscale_ = 0.1 * jax.random.normal(
            k5, (1, 1, self.ksize, self.ksize), jnp.float32)     # (Cin,Cout,K,K)
        self.w_upscale = 0.1 * jax.random.normal(
            k6, (16, 16, self.ksize, self.ksize), jnp.float32)   # (Cin,Cout,K,K)

        # --- packed-once kernel weights (no per-call repacking) --------------
        s = self.stride
        Cp = self.cin_pad = _round_up(prev_nfilters, 8)

        # Head: rows 0..15 = side_prep taps, row 16 = folded score_dsn row.
        w_sp_p = jnp.pad(self.w_side_prep,
                         ((0, 0), (0, Cp - prev_nfilters), (0, 0), (0, 0)))
        wsp_packed = jnp.transpose(w_sp_p, (0, 2, 3, 1)).reshape(16, 9 * Cp)
        wsd_mat = self.w_score_dsn.reshape(1, 16)
        wh = jnp.zeros((_HEAD_ROWS, 9 * Cp), jnp.float32)
        wh = wh.at[0:16].set(wsp_packed)
        wh = wh.at[16:17].set(wsd_mat @ wsp_packed)
        bh = jnp.zeros((_HEAD_ROWS, 1), jnp.float32)
        bh = bh.at[0:16, 0].set(self.b_side_prep)
        bh = bh.at[16, 0].set(jnp.dot(wsd_mat[0], self.b_side_prep)
                              + self.b_score_dsn[0])
        self.wh_packed, self.bh_packed = wh, bh

        # Stage 2: both transposed convs in one (s*s*17, 4*_HEAD_ROWS) weight.
        wup_p = _pack_conv_transpose_weights(self.w_upscale, s)   # (s*s*16, 64)
        wsc_p = _pack_conv_transpose_weights(self.w_upscale_, s)  # (s*s,    4)
        self.pout = s * s * 17
        self.pout_pad = _round_up(self.pout, 8)
        w2 = jnp.zeros((self.pout_pad, 4 * _HEAD_ROWS), jnp.float32)
        for idx in range(4):
            w2 = w2.at[0:s * s * 16,
                       idx * _HEAD_ROWS:idx * _HEAD_ROWS + 16].set(
                wup_p[:, idx * 16:(idx + 1) * 16])
            w2 = w2.at[s * s * 16:s * s * 17, idx * _HEAD_ROWS + 16].set(
                wsc_p[:, idx])
        self.w2_packed = w2

    def __call__(self, x_ncthw, crop_h, crop_w):
        N, C, T, H, W = x_ncthw.shape
        assert T == self.nsamples and C == self.cin
        s = self.stride
        Cp = self.cin_pad
        Wp = W + 2                          # padded row width (both stages)
        Hq, Wq = H + 1, W + 1               # per-phase deconv size (K == 2s)
        Mo1, Mo2 = H * Wp, Hq * Wp
        mo1_pad = _round_up(Mo1, 128)       # lane-dense output widths
        mo2_pad = _round_up(Mo2, 128)
        L1 = _round_up(2 * Wp + 2 + mo1_pad, 128)
        pad_off = _round_up(Wp + 1, 128)
        L2 = _round_up(pad_off + max(mo1_pad, mo2_pad), 128)

        # Host-constant 0/1 mask zeroing the two row-seam columns + lane pad.
        lane = np.arange(mo1_pad)
        mask1 = jnp.asarray(((lane < Mo1) & ((lane % Wp) < W))
                            .astype(np.float32)[None, :])

        so_flat, ph_flat = _fused_forward(
            x_ncthw, mask1, self.wh_packed, self.bh_packed, self.w2_packed,
            Cp=Cp, pout_pad=self.pout_pad, mo1_pad=mo1_pad, mo2_pad=mo2_pad,
            L1=L1, L2=L2)

        side_out_tmp = so_flat[:, :, :Mo1].reshape(N, 1, H, Wp)[:, :, :, :W]

        def _interleave(o, cout):
            # (N, s*s*cout, Mo2) phases -> (N, cout, (H+1)*s, (W+1)*s)
            o = o.reshape(N, s, s, cout, Hq, Wp)[:, :, :, :, :, :Wq]
            o = jnp.transpose(o, (0, 3, 4, 1, 5, 2))
            return o.reshape(N, cout, Hq * s, Wq * s)

        ph_up = ph_flat[:, :s * s * 16, :Mo2]
        ph_sc = ph_flat[:, s * s * 16:s * s * 17, :Mo2]
        side = center_crop_nchw(_interleave(ph_up, 16), crop_h, crop_w)
        side_out = center_crop_nchw(_interleave(ph_sc, 1), crop_h, crop_w)
        return side, side_out, side_out_tmp


# ----------------------------------------------------------------------------
# Plain-JAX reference (PyTorch semantics) for correctness checking
# ----------------------------------------------------------------------------
def _reference_forward(x_ncthw, model, crop_h, crop_w):
    hi = jax.lax.Precision.HIGHEST
    x = jnp.mean(x_ncthw.astype(jnp.float32), axis=2)          # avgpool+squeeze

    def conv(v, w, b, pad):
        out = jax.lax.conv_general_dilated(
            v, w, window_strides=(1, 1), padding=[(pad, pad), (pad, pad)],
            dimension_numbers=("NCHW", "OIHW", "NCHW"), precision=hi)
        return out + b.reshape(1, -1, 1, 1)

    def convT(v, wt, stride):
        K = wt.shape[-1]
        rhs = jnp.transpose(wt, (1, 0, 2, 3))[:, :, ::-1, ::-1]
        return jax.lax.conv_general_dilated(
            v, rhs, window_strides=(1, 1),
            padding=[(K - 1, K - 1), (K - 1, K - 1)],
            lhs_dilation=(stride, stride),
            dimension_numbers=("NCHW", "OIHW", "NCHW"), precision=hi)

    side_temp = conv(x, model.w_side_prep, model.b_side_prep, 1)
    side = center_crop_nchw(convT(side_temp, model.w_upscale, model.stride),
                            crop_h, crop_w)
    side_out_tmp = conv(side_temp, model.w_score_dsn, model.b_score_dsn, 0)
    side_out = center_crop_nchw(
        convT(side_out_tmp, model.w_upscale_, model.stride), crop_h, crop_w)
    return side, side_out, side_out_tmp


if __name__ == "__main__":
    key = jax.random.PRNGKey(0)
    kparam, kx = jax.random.split(key)

    prev_layer, prev_nfilters, prev_nsamples = 1, 4, 2
    N, H, W = 2, 16, 16
    crop_h, crop_w = 32, 32

    model = DsamScoreDsnPallas(prev_layer, prev_nfilters, prev_nsamples, kparam)
    x = jax.random.normal(kx, (N, prev_nfilters, prev_nsamples, H, W),
                          jnp.float32)

    fwd = jax.jit(lambda inp: model(inp, crop_h, crop_w))
    side, side_out, side_out_tmp = jax.block_until_ready(fwd(x))

    assert side.shape == (N, 16, crop_h, crop_w), side.shape
    assert side_out.shape == (N, 1, crop_h, crop_w), side_out.shape
    assert side_out_tmp.shape == (N, 1, H, W), side_out_tmp.shape

    ref = _reference_forward(x, model, crop_h, crop_w)
    for got, want, name in zip((side, side_out, side_out_tmp), ref,
                               ("side", "side_out", "side_out_tmp")):
        assert bool(jnp.all(jnp.isfinite(got))), name
        err = float(jnp.max(jnp.abs(got - want)))
        assert err < 2e-2, (name, err)

    print("KERNEL_OK")
</pallas_src>

<mosaic_0001>
module attributes {stable_mosaic.version = 11 : i64} {
  func.func @_fused_kernel(%arg0: i32, %arg1: memref<1x4x2x16x16xf32, #tpu.memory_space<vmem>>, %arg2: memref<1x384xf32, #tpu.memory_space<vmem>>, %arg3: memref<24x72xf32, #tpu.memory_space<vmem>>, %arg4: memref<24x1xf32, #tpu.memory_space<vmem>>, %arg5: memref<72x96xf32, #tpu.memory_space<vmem>>, %arg6: memref<1x1x384xf32, #tpu.memory_space<vmem>>, %arg7: memref<1x72x384xf32, #tpu.memory_space<vmem>>, %arg8: memref<8x512xf32, #tpu.memory_space<vmem>>, %arg9: memref<72x384xf32, #tpu.memory_space<vmem>>, %arg10: memref<24x512xf32, #tpu.memory_space<vmem>>, %arg11: memref<96x384xf32, #tpu.memory_space<vmem>>) attributes {dimension_semantics = [#tpu.dimension_semantics<parallel>], iteration_bounds = array<i64: 2>, scalar_prefetch = 0 : i64, scratch_operands = 4 : i64, tpu.core_type = #tpu.core_type<tc>, window_params = [{transform_indices = @transform_0, window_bounds = array<i64: 1, 4, 2, 16, 16>}, {pipeline_mode = #tpu.pipeline_mode<synchronous>, transform_indices = @transform_1, window_bounds = array<i64: 1, 384>}, {pipeline_mode = #tpu.pipeline_mode<synchronous>, transform_indices = @transform_2, window_bounds = array<i64: 24, 72>}, {pipeline_mode = #tpu.pipeline_mode<synchronous>, transform_indices = @transform_3, window_bounds = array<i64: 24, 1>}, {pipeline_mode = #tpu.pipeline_mode<synchronous>, transform_indices = @transform_4, window_bounds = array<i64: 72, 96>}, {transform_indices = @transform_5, window_bounds = array<i64: 1, 1, 384>}, {transform_indices = @transform_6, window_bounds = array<i64: 1, 72, 384>}]} {
    %c0 = arith.constant 0 : index
    %c0_0 = arith.constant 0 : index
    %c0_1 = arith.constant 0 : index
    %c0_2 = arith.constant 0 : index
    %c0_3 = arith.constant 0 : index
    %0 = vector.load %arg1[%c0, %c0_0, %c0_1, %c0_2, %c0_3] : memref<1x4x2x16x16xf32, #tpu.memory_space<vmem>>, vector<1x4x2x16x16xf32>
    %1 = vector.shape_cast %0 : vector<1x4x2x16x16xf32> to vector<4x2x16x16xf32>
    %2 = vector.extract_strided_slice %1 {offsets = [0, 0, 0, 0], sizes = [4, 1, 16, 16], strides = [1, 1, 1, 1]} : vector<4x2x16x16xf32> to vector<4x1x16x16xf32>
    %3 = vector.shape_cast %2 : vector<4x1x16x16xf32> to vector<4x16x16xf32>
    %4 = vector.extract_strided_slice %1 {offsets = [0, 1, 0, 0], sizes = [4, 1, 16, 16], strides = [1, 1, 1, 1]} : vector<4x2x16x16xf32> to vector<4x1x16x16xf32>
    %5 = vector.shape_cast %4 : vector<4x1x16x16xf32> to vector<4x16x16xf32>
    %6 = arith.addf %3, %5 : vector<4x16x16xf32>
    %cst = arith.constant 5.000000e-01 : f32
    %7 = vector.broadcast %cst : f32 to vector<4x16x16xf32>
    %8 = arith.mulf %6, %7 : vector<4x16x16xf32>
    %cst_4 = arith.constant 0.000000e+00 : f32
    %9 = vector.broadcast %cst_4 : f32 to vector<4x16x16xf32>
    %10 = tpu.concatenate %8, %9 in 0 : vector<4x16x16xf32>, vector<4x16x16xf32> -> vector<8x16x16xf32>
    %cst_5 = arith.constant 0.000000e+00 : f32
    %11 = vector.broadcast %cst_5 : f32 to vector<8x512xf32>
    %c0_6 = arith.constant 0 : index
    %c0_7 = arith.constant 0 : index
    %12 = vector.load %arg8[%c0_6, %c0_7] : memref<8x512xf32, #tpu.memory_space<vmem>>, vector<8x512xf32>
    tpu.vector_store %arg8[%c0_6, %c0_7], %11 {strides = array<i32>} : memref<8x512xf32, #tpu.memory_space<vmem>>, vector<8x512xf32>,
    %13 = vector.extract_strided_slice %10 {offsets = [0, 0, 0], sizes = [8, 1, 16], strides = [1, 1, 1]} : vector<8x16x16xf32> to vector<8x1x16xf32>
    %14 = vector.shape_cast %13 : vector<8x1x16xf32> to vector<8x16xf32>
    %c0_8 = arith.constant 0 : index
    %c19 = arith.constant 19 : index
    %15 = vector.load %arg8[%c0_8, %c19] : memref<8x512xf32, #tpu.memory_space<vmem>>, vector<8x16xf32>
    tpu.vector_store %arg8[%c0_8, %c19], %14 {strides = array<i32>} : memref<8x512xf32, #tpu.memory_space<vmem>>, vector<8x16xf32>,
    %16 = vector.extract_strided_slice %10 {offsets = [0, 1, 0], sizes = [8, 1, 16], strides = [1, 1, 1]} : vector<8x16x16xf32> to vector<8x1x16xf32>
    %17 = vector.shape_cast %16 : vector<8x1x16xf32> to vector<8x16xf32>
    %c0_9 = arith.constant 0 : index
    %c37 = arith.constant 37 : index
    %18 = vector.load %arg8[%c0_9, %c37] : memref<8x512xf32, #tpu.memory_space<vmem>>, vector<8x16xf32>
    tpu.vector_store %arg8[%c0_9, %c37], %17 {strides = array<i32>} : memref<8x512xf32, #tpu.memory_space<vmem>>, vector<8x16xf32>,
    %19 = vector.extract_strided_slice %10 {offsets = [0, 2, 0], sizes = [8, 1, 16], strides = [1, 1, 1]} : vector<8x16x16xf32> to vector<8x1x16xf32>
    %20 = vector.shape_cast %19 : vector<8x1x16xf32> to vector<8x16xf32>
    %c0_10 = arith.constant 0 : index
    %c55 = arith.constant 55 : index
    %21 = vector.load %arg8[%c0_10, %c55] : memref<8x512xf32, #tpu.memory_space<vmem>>, vector<8x16xf32>
    tpu.vector_store %arg8[%c0_10, %c55], %20 {strides = array<i32>} : memref<8x512xf32, #tpu.memory_space<vmem>>, vector<8x16xf32>,
    %22 = vector.extract_strided_slice %10 {offsets = [0, 3, 0], sizes = [8, 1, 16], strides = [1, 1, 1]} : vector<8x16x16xf32> to vector<8x1x16xf32>
    %23 = vector.shape_cast %22 : vector<8x1x16xf32> to vector<8x16xf32>
    %c0_11 = arith.constant 0 : index
    %c73 = arith.constant 73 : index
    %24 = vector.load %arg8[%c0_11, %c73] : memref<8x512xf32, #tpu.memory_space<vmem>>, vector<8x16xf32>
    tpu.vector_store %arg8[%c0_11, %c73], %23 {strides = array<i32>} : memref<8x512xf32, #tpu.memory_space<vmem>>, vector<8x16xf32>,
    %25 = vector.extract_strided_slice %10 {offsets = [0, 4, 0], sizes = [8, 1, 16], strides = [1, 1, 1]} : vector<8x16x16xf32> to vector<8x1x16xf32>
    %26 = vector.shape_cast %25 : vector<8x1x16xf32> to vector<8x16xf32>
    %c0_12 = arith.constant 0 : index
    %c91 = arith.constant 91 : index
    %27 = vector.load %arg8[%c0_12, %c91] : memref<8x512xf32, #tpu.memory_space<vmem>>, vector<8x16xf32>
    tpu.vector_store %arg8[%c0_12, %c91], %26 {strides = array<i32>} : memref<8x512xf32, #tpu.memory_space<vmem>>, vector<8x16xf32>,
    %28 = vector.extract_strided_slice %10 {offsets = [0, 5, 0], sizes = [8, 1, 16], strides = [1, 1, 1]} : vector<8x16x16xf32> to vector<8x1x16xf32>
    %29 = vector.shape_cast %28 : vector<8x1x16xf32> to vector<8x16xf32>
    %c0_13 = arith.constant 0 : index
    %c109 = arith.constant 109 : index
    %30 = vector.load %arg8[%c0_13, %c109] : memref<8x512xf32, #tpu.memory_space<vmem>>, vector<8x16xf32>
    tpu.vector_store %arg8[%c0_13, %c109], %29 {strides = array<i32>} : memref<8x512xf32, #tpu.memory_space<vmem>>, vector<8x16xf32>,
    %31 = vector.extract_strided_slice %10 {offsets = [0, 6, 0], sizes = [8, 1, 16], strides = [1, 1, 1]} : vector<8x16x16xf32> to vector<8x1x16xf32>
    %32 = vector.shape_cast %31 : vector<8x1x16xf32> to vector<8x16xf32>
    %c0_14 = arith.constant 0 : index
    %c127 = arith.constant 127 : index
    %33 = vector.load %arg8[%c0_14, %c127] : memref<8x512xf32, #tpu.memory_space<vmem>>, vector<8x16xf32>
    tpu.vector_store %arg8[%c0_14, %c127], %32 {strides = array<i32>} : memref<8x512xf32, #tpu.memory_space<vmem>>, vector<8x16xf32>,
    %34 = vector.extract_strided_slice %10 {offsets = [0, 7, 0], sizes = [8, 1, 16], strides = [1, 1, 1]} : vector<8x16x16xf32> to vector<8x1x16xf32>
    %35 = vector.shape_cast %34 : vector<8x1x16xf32> to vector<8x16xf32>
    %c0_15 = arith.constant 0 : index
    %c145 = arith.constant 145 : index
    %36 = vector.load %arg8[%c0_15, %c145] : memref<8x512xf32, #tpu.memory_space<vmem>>, vector<8x16xf32>
    tpu.vector_store %arg8[%c0_15, %c145], %35 {strides = array<i32>} : memref<8x512xf32, #tpu.memory_space<vmem>>, vector<8x16xf32>,
    %37 = vector.extract_strided_slice %10 {offsets = [0, 8, 0], sizes = [8, 1, 16], strides = [1, 1, 1]} : vector<8x16x16xf32> to vector<8x1x16xf32>
    %38 = vector.shape_cast %37 : vector<8x1x16xf32> to vector<8x16xf32>
    %c0_16 = arith.constant 0 : index
    %c163 = arith.constant 163 : index
    %39 = vector.load %arg8[%c0_16, %c163] : memref<8x512xf32, #tpu.memory_space<vmem>>, vector<8x16xf32>
    tpu.vector_store %arg8[%c0_16, %c163], %38 {strides = array<i32>} : memref<8x512xf32, #tpu.memory_space<vmem>>, vector<8x16xf32>,
    %40 = vector.extract_strided_slice %10 {offsets = [0, 9, 0], sizes = [8, 1, 16], strides = [1, 1, 1]} : vector<8x16x16xf32> to vector<8x1x16xf32>
    %41 = vector.shape_cast %40 : vector<8x1x16xf32> to vector<8x16xf32>
    %c0_17 = arith.constant 0 : index
    %c181 = arith.constant 181 : index
    %42 = vector.load %arg8[%c0_17, %c181] : memref<8x512xf32, #tpu.memory_space<vmem>>, vector<8x16xf32>
    tpu.vector_store %arg8[%c0_17, %c181], %41 {strides = array<i32>} : memref<8x512xf32, #tpu.memory_space<vmem>>, vector<8x16xf32>,
    %43 = vector.extract_strided_slice %10 {offsets = [0, 10, 0], sizes = [8, 1, 16], strides = [1, 1, 1]} : vector<8x16x16xf32> to vector<8x1x16xf32>
    %44 = vector.shape_cast %43 : vector<8x1x16xf32> to vector<8x16xf32>
    %c0_18 = arith.constant 0 : index
    %c199 = arith.constant 199 : index
    %45 = vector.load %arg8[%c0_18, %c199] : memref<8x512xf32, #tpu.memory_space<vmem>>, vector<8x16xf32>
    tpu.vector_store %arg8[%c0_18, %c199], %44 {strides = array<i32>} : memref<8x512xf32, #tpu.memory_space<vmem>>, vector<8x16xf32>,
    %46 = vector.extract_strided_slice %10 {offsets = [0, 11, 0], sizes = [8, 1, 16], strides = [1, 1, 1]} : vector<8x16x16xf32> to vector<8x1x16xf32>
    %47 = vector.shape_cast %46 : vector<8x1x16xf32> to vector<8x16xf32>
    %c0_19 = arith.constant 0 : index
    %c217 = arith.constant 217 : index
    %48 = vector.load %arg8[%c0_19, %c217] : memref<8x512xf32, #tpu.memory_space<vmem>>, vector<8x16xf32>
    tpu.vector_store %arg8[%c0_19, %c217], %47 {strides = array<i32>} : memref<8x512xf32, #tpu.memory_space<vmem>>, vector<8x16xf32>,
    %49 = vector.extract_strided_slice %10 {offsets = [0, 12, 0], sizes = [8, 1, 16], strides = [1, 1, 1]} : vector<8x16x16xf32> to vector<8x1x16xf32>
    %50 = vector.shape_cast %49 : vector<8x1x16xf32> to vector<8x16xf32>
    %c0_20 = arith.constant 0 : index
    %c235 = arith.constant 235 : index
    %51 = vector.load %arg8[%c0_20, %c235] : memref<8x512xf32, #tpu.memory_space<vmem>>, vector<8x16xf32>
    tpu.vector_store %arg8[%c0_20, %c235], %50 {strides = array<i32>} : memref<8x512xf32, #tpu.memory_space<vmem>>, vector<8x16xf32>,
    %52 = vector.extract_strided_slice %10 {offsets = [0, 13, 0], sizes = [8, 1, 16], strides = [1, 1, 1]} : vector<8x16x16xf32> to vector<8x1x16xf32>
    %53 = vector.shape_cast %52 : vector<8x1x16xf32> to vector<8x16xf32>
    %c0_21 = arith.constant 0 : index
    %c253 = arith.constant 253 : index
    %54 = vector.load %arg8[%c0_21, %c253] : memref<8x512xf32, #tpu.memory_space<vmem>>, vector<8x16xf32>
    tpu.vector_store %arg8[%c0_21, %c253], %53 {strides = array<i32>} : memref<8x512xf32, #tpu.memory_space<vmem>>, vector<8x16xf32>,
    %55 = vector.extract_strided_slice %10 {offsets = [0, 14, 0], sizes = [8, 1, 16], strides = [1, 1, 1]} : vector<8x16x16xf32> to vector<8x1x16xf32>
    %56 = vector.shape_cast %55 : vector<8x1x16xf32> to vector<8x16xf32>
    %c0_22 = arith.constant 0 : index
    %c271 = arith.constant 271 : index
    %57 = vector.load %arg8[%c0_22, %c271] : memref<8x512xf32, #tpu.memory_space<vmem>>, vector<8x16xf32>
    tpu.vector_store %arg8[%c0_22, %c271], %56 {strides = array<i32>} : memref<8x512xf32, #tpu.memory_space<vmem>>, vector<8x16xf32>,
    %58 = vector.extract_strided_slice %10 {offsets = [0, 15, 0], sizes = [8, 1, 16], strides = [1, 1, 1]} : vector<8x16x16xf32> to vector<8x1x16xf32>
    %59 = vector.shape_cast %58 : vector<8x1x16xf32> to vector<8x16xf32>
    %c0_23 = arith.constant 0 : index
    %c289 = arith.constant 289 : index
    %60 = vector.load %arg8[%c0_23, %c289] : memref<8x512xf32, #tpu.memory_space<vmem>>, vector<8x16xf32>
    tpu.vector_store %arg8[%c0_23, %c289], %59 {strides = array<i32>} : memref<8x512xf32, #tpu.memory_space<vmem>>, vector<8x16xf32>,
    %c0_24 = arith.constant 0 : index
    %c0_25 = arith.constant 0 : index
    %61 = vector.load %arg8[%c0_24, %c0_25] : memref<8x512xf32, #tpu.memory_space<vmem>>, vector<8x384xf32>
    %c0_26 = arith.constant 0 : index
    %c0_27 = arith.constant 0 : index
    %62 = vector.load %arg9[%c0_26, %c0_27] : memref<72x384xf32, #tpu.memory_space<vmem>>, vector<8x384xf32>
    tpu.vector_store %arg9[%c0_26, %c0_27], %61 {strides = array<i32>} : memref<72x384xf32, #tpu.memory_space<vmem>>, vector<8x384xf32>,
    %c0_28 = arith.constant 0 : index
    %c1 = arith.constant 1 : index
    %63 = vector.load %arg8[%c0_28, %c1] : memref<8x512xf32, #tpu.memory_space<vmem>>, vector<8x384xf32>
    %c8 = arith.constant 8 : index
    %c0_29 = arith.constant 0 : index
    %64 = vector.load %arg9[%c8, %c0_29] : memref<72x384xf32, #tpu.memory_space<vmem>>, vector<8x384xf32>
    tpu.vector_store %arg9[%c8, %c0_29], %63 {strides = array<i32>} : memref<72x384xf32, #tpu.memory_space<vmem>>, vector<8x384xf32>,
    %c0_30 = arith.constant 0 : index
    %c2 = arith.constant 2 : index
    %65 = vector.load %arg8[%c0_30, %c2] : memref<8x512xf32, #tpu.memory_space<vmem>>, vector<8x384xf32>
    %c16 = arith.constant 16 : index
    %c0_31 = arith.constant 0 : index
    %66 = vector.load %arg9[%c16, %c0_31] : memref<72x384xf32, #tpu.memory_space<vmem>>, vector<8x384xf32>
    tpu.vector_store %arg9[%c16, %c0_31], %65 {strides = array<i32>} : memref<72x384xf32, #tpu.memory_space<vmem>>, vector<8x384xf32>,
    %c0_32 = arith.constant 0 : index
    %c18 = arith.constant 18 : index
    %67 = vector.load %arg8[%c0_32, %c18] : memref<8x512xf32, #tpu.memory_space<vmem>>, vector<8x384xf32>
    %c24 = arith.constant 24 : index
    %c0_33 = arith.constant 0 : index
    %68 = vector.load %arg9[%c24, %c0_33] : memref<72x384xf32, #tpu.memory_space<vmem>>, vector<8x384xf32>
    tpu.vector_store %arg9[%c24, %c0_33], %67 {strides = array<i32>} : memref<72x384xf32, #tpu.memory_space<vmem>>, vector<8x384xf32>,
    %c0_34 = arith.constant 0 : index
    %c19_35 = arith.constant 19 : index
    %69 = vector.load %arg8[%c0_34, %c19_35] : memref<8x512xf32, #tpu.memory_space<vmem>>, vector<8x384xf32>
    %c32 = arith.constant 32 : index
    %c0_36 = arith.constant 0 : index
    %70 = vector.load %arg9[%c32, %c0_36] : memref<72x384xf32, #tpu.memory_space<vmem>>, vector<8x384xf32>
    tpu.vector_store %arg9[%c32, %c0_36], %69 {strides = array<i32>} : memref<72x384xf32, #tpu.memory_space<vmem>>, vector<8x384xf32>,
    %c0_37 = arith.constant 0 : index
    %c20 = arith.constant 20 : index
    %71 = vector.load %arg8[%c0_37, %c20] : memref<8x512xf32, #tpu.memory_space<vmem>>, vector<8x384xf32>
    %c40 = arith.constant 40 : index
    %c0_38 = arith.constant 0 : index
    %72 = vector.load %arg9[%c40, %c0_38] : memref<72x384xf32, #tpu.memory_space<vmem>>, vector<8x384xf32>
    tpu.vector_store %arg9[%c40, %c0_38], %71 {strides = array<i32>} : memref<72x384xf32, #tpu.memory_space<vmem>>, vector<8x384xf32>,
    %c0_39 = arith.constant 0 : index
    %c36 = arith.constant 36 : index
    %73 = vector.load %arg8[%c0_39, %c36] : memref<8x512xf32, #tpu.memory_space<vmem>>, vector<8x384xf32>
    %c48 = arith.constant 48 : index
    %c0_40 = arith.constant 0 : index
    %74 = vector.load %arg9[%c48, %c0_40] : memref<72x384xf32, #tpu.memory_space<vmem>>, vector<8x384xf32>
    tpu.vector_store %arg9[%c48, %c0_40], %73 {strides = array<i32>} : memref<72x384xf32, #tpu.memory_space<vmem>>, vector<8x384xf32>,
    %c0_41 = arith.constant 0 : index
    %c37_42 = arith.constant 37 : index
    %75 = vector.load %arg8[%c0_41, %c37_42] : memref<8x512xf32, #tpu.memory_space<vmem>>, vector<8x384xf32>
    %c56 = arith.constant 56 : index
    %c0_43 = arith.constant 0 : index
    %76 = vector.load %arg9[%c56, %c0_43] : memref<72x384xf32, #tpu.memory_space<vmem>>, vector<8x384xf32>
    tpu.vector_store %arg9[%c56, %c0_43], %75 {strides = array<i32>} : memref<72x384xf32, #tpu.memory_space<vmem>>, vector<8x384xf32>,
    %c0_44 = arith.constant 0 : index
    %c38 = arith.constant 38 : index
    %77 = vector.load %arg8[%c0_44, %c38] : memref<8x512xf32, #tpu.memory_space<vmem>>, vector<8x384xf32>
    %c64 = arith.constant 64 : index
    %c0_45 = arith.constant 0 : index
    %78 = vector.load %arg9[%c64, %c0_45] : memref<72x384xf32, #tpu.memory_space<vmem>>, vector<8x384xf32>
    tpu.vector_store %arg9[%c64, %c0_45], %77 {strides = array<i32>} : memref<72x384xf32, #tpu.memory_space<vmem>>, vector<8x384xf32>,
    %c0_46 = arith.constant 0 : index
    %c0_47 = arith.constant 0 : index
    %79 = vector.load %arg3[%c0_46, %c0_47] : memref<24x72xf32, #tpu.memory_space<vmem>>, vector<24x72xf32>
    %c0_48 = arith.constant 0 : index
    %c0_49 = arith.constant 0 : index
    %80 = vector.load %arg9[%c0_48, %c0_49] : memref<72x384xf32, #tpu.memory_space<vmem>>, vector<72x384xf32>
    %cst_50 = arith.constant dense<0.000000e+00> : vector<24x384xf32>
    %81 = tpu.matmul %79, %80, %cst_50 {dimension_numbers = #tpu.dot_dimension_numbers<[1], [0], [0], [1], [0, 0, 1, 1], [], []>} : vector<24x72xf32>, vector<72x384xf32>, vector<24x384xf32> -> vector<24x384xf32>
    %c0_51 = arith.constant 0 : index
    %c0_52 = arith.constant 0 : index
    %82 = vector.load %arg4[%c0_51, %c0_52] : memref<24x1xf32, #tpu.memory_space<vmem>>, vector<24x1xf32>
    %83 = vector.broadcast %82 : vector<24x1xf32> to vector<24x384xf32>
    %84 = arith.addf %81, %83 : vector<24x384xf32>
    %c0_53 = arith.constant 0 : index
    %c0_54 = arith.constant 0 : index
    %85 = vector.load %arg2[%c0_53, %c0_54] : memref<1x384xf32, #tpu.memory_space<vmem>>, vector<1x384xf32>
    %86 = vector.broadcast %85 : vector<1x384xf32> to vector<24x384xf32>
    %87 = arith.mulf %84, %86 : vector<24x384xf32>
    %88 = vector.extract_strided_slice %87 {offsets = [16, 0], sizes = [1, 384], strides = [1, 1]} : vector<24x384xf32> to vector<1x384xf32>
    %c0_55 = arith.constant 0 : index
    %c0_56 = arith.constant 0 : index
    %c0_57 = arith.constant 0 : index
    %89 = vector.load %arg6[%c0_55, %c0_56, %c0_57] : memref<1x1x384xf32, #tpu.memory_space<vmem>>, vector<1x1x384xf32>
    %90 = vector.shape_cast %89 : vector<1x1x384xf32> to vector<1x384xf32>
    %91 = vector.shape_cast %88 : vector<1x384xf32> to vector<1x1x384xf32>
    tpu.vector_store %arg6[%c0_55, %c0_56, %c0_57], %91 {strides = array<i32>} : memref<1x1x384xf32, #tpu.memory_space<vmem>>, vector<1x1x384xf32>,
    %cst_58 = arith.constant 0.000000e+00 : f32
    %92 = vector.broadcast %cst_58 : f32 to vector<24x512xf32>
    %c0_59 = arith.constant 0 : index
    %c0_60 = arith.constant 0 : index
    %93 = vector.load %arg10[%c0_59, %c0_60] : memref<24x512xf32, #tpu.memory_space<vmem>>, vector<24x512xf32>
    tpu.vector_store %arg10[%c0_59, %c0_60], %92 {strides = array<i32>} : memref<24x512xf32, #tpu.memory_space<vmem>>, vector<24x512xf32>,
    %c0_61 = arith.constant 0 : index
    %c128 = arith.constant 128 : index
    %94 = vector.load %arg10[%c0_61, %c128] : memref<24x512xf32, #tpu.memory_space<vmem>>, vector<24x384xf32>
    tpu.vector_store %arg10[%c0_61, %c128], %87 {strides = array<i32>} : memref<24x512xf32, #tpu.memory_space<vmem>>, vector<24x384xf32>,
    %c0_62 = arith.constant 0 : index
    %c109_63 = arith.constant 109 : index
    %95 = vector.load %arg10[%c0_62, %c109_63] : memref<24x512xf32, #tpu.memory_space<vmem>>, vector<24x384xf32>
    %c0_64 = arith.constant 0 : index
    %c0_65 = arith.constant 0 : index
    %96 = vector.load %arg11[%c0_64, %c0_65] : memref<96x384xf32, #tpu.memory_space<vmem>>, vector<24x384xf32>
    tpu.vector_store %arg11[%c0_64, %c0_65], %95 {strides = array<i32>} : memref<96x384xf32, #tpu.memory_space<vmem>>, vector<24x384xf32>,
    %c0_66 = arith.constant 0 : index
    %c110 = arith.constant 110 : index
    %97 = vector.load %arg10[%c0_66, %c110] : memref<24x512xf32, #tpu.memory_space<vmem>>, vector<24x384xf32>
    %c24_67 = arith.constant 24 : index
    %c0_68 = arith.constant 0 : index
    %98 = vector.load %arg11[%c24_67, %c0_68] : memref<96x384xf32, #tpu.memory_space<vmem>>, vector<24x384xf32>
    tpu.vector_store %arg11[%c24_67, %c0_68], %97 {strides = array<i32>} : memref<96x384xf32, #tpu.memory_space<vmem>>, vector<24x384xf32>,
    %c0_69 = arith.constant 0 : index
    %c127_70 = arith.constant 127 : index
    %99 = vector.load %arg10[%c0_69, %c127_70] : memref<24x512xf32, #tpu.memory_space<vmem>>, vector<24x384xf32>
    %c48_71 = arith.constant 48 : index
    %c0_72 = arith.constant 0 : index
    %100 = vector.load %arg11[%c48_71, %c0_72] : memref<96x384xf32, #tpu.memory_space<vmem>>, vector<24x384xf32>
    tpu.vector_store %arg11[%c48_71, %c0_72], %99 {strides = array<i32>} : memref<96x384xf32, #tpu.memory_space<vmem>>, vector<24x384xf32>,
    %c0_73 = arith.constant 0 : index
    %c128_74 = arith.constant 128 : index
    %101 = vector.load %arg10[%c0_73, %c128_74] : memref<24x512xf32, #tpu.memory_space<vmem>>, vector<24x384xf32>
    %c72 = arith.constant 72 : index
    %c0_75 = arith.constant 0 : index
    %102 = vector.load %arg11[%c72, %c0_75] : memref<96x384xf32, #tpu.memory_space<vmem>>, vector<24x384xf32>
    tpu.vector_store %arg11[%c72, %c0_75], %101 {strides = array<i32>} : memref<96x384xf32, #tpu.memory_space<vmem>>, vector<24x384xf32>,
    %c0_76 = arith.constant 0 : index
    %c0_77 = arith.constant 0 : index
    %103 = vector.load %arg5[%c0_76, %c0_77] : memref<72x96xf32, #tpu.memory_space<vmem>>, vector<72x96xf32>
    %c0_78 = arith.constant 0 : index
    %c0_79 = arith.constant 0 : index
    %104 = vector.load %arg11[%c0_78, %c0_79] : memref<96x384xf32, #tpu.memory_space<vmem>>, vector<96x384xf32>
    %cst_80 = arith.constant dense<0.000000e+00> : vector<72x384xf32>
    %105 = tpu.matmul %103, %104, %cst_80 {dimension_numbers = #tpu.dot_dimension_numbers<[1], [0], [0], [1], [0, 0, 1, 1], [], []>} : vector<72x96xf32>, vector<96x384xf32>, vector<72x384xf32> -> vector<72x384xf32>
    %c0_81 = arith.constant 0 : index
    %c0_82 = arith.constant 0 : index
    %c0_83 = arith.constant 0 : index
    %106 = vector.load %arg7[%c0_81, %c0_82, %c0_83] : memref<1x72x384xf32, #tpu.memory_space<vmem>>, vector<1x72x384xf32>
    %107 = vector.shape_cast %106 : vector<1x72x384xf32> to vector<72x384xf32>
    %108 = vector.shape_cast %105 : vector<72x384xf32> to vector<1x72x384xf32>
    tpu.vector_store %arg7[%c0_81, %c0_82, %c0_83], %108 {strides = array<i32>} : memref<1x72x384xf32, #tpu.memory_space<vmem>>, vector<1x72x384xf32>,
    return
  }
  func.func @transform_0(%arg0: i32) -> (i32, i32, i32, i32, i32) {
    %c0_i32 = arith.constant 0 : i32
    %c0_i32_0 = arith.constant 0 : i32
    %c0_i32_1 = arith.constant 0 : i32
    %c0_i32_2 = arith.constant 0 : i32
    %c0_i32_3 = arith.constant 0 : i32
    return %arg0, %c0_i32, %c0_i32_0, %c0_i32_1, %c0_i32_2 : i32, i32, i32, i32, i32
  }
  func.func @transform_1(%arg0: i32) -> (i32, i32) {
    %c0_i32 = arith.constant 0 : i32
    %c0_i32_0 = arith.constant 0 : i32
    %c0_i32_1 = arith.constant 0 : i32
    return %c0_i32, %c0_i32_0 : i32, i32
  }
  func.func @transform_2(%arg0: i32) -> (i32, i32) {
    %c0_i32 = arith.constant 0 : i32
    %c0_i32_0 = arith.constant 0 : i32
    %c0_i32_1 = arith.constant 0 : i32
    return %c0_i32, %c0_i32_0 : i32, i32
  }
  func.func @transform_3(%arg0: i32) -> (i32, i32) {
    %c0_i32 = arith.constant 0 : i32
    %c0_i32_0 = arith.constant 0 : i32
    %c0_i32_1 = arith.constant 0 : i32
    return %c0_i32, %c0_i32_0 : i32, i32
  }
  func.func @transform_4(%arg0: i32) -> (i32, i32) {
    %c0_i32 = arith.constant 0 : i32
    %c0_i32_0 = arith.constant 0 : i32
    %c0_i32_1 = arith.constant 0 : i32
    return %c0_i32, %c0_i32_0 : i32, i32
  }
  func.func @transform_5(%arg0: i32) -> (i32, i32, i32) {
    %c0_i32 = arith.constant 0 : i32
    %c0_i32_0 = arith.constant 0 : i32
    %c0_i32_1 = arith.constant 0 : i32
    return %arg0, %c0_i32, %c0_i32_0 : i32, i32, i32
  }
  func.func @transform_6(%arg0: i32) -> (i32, i32, i32) {
    %c0_i32 = arith.constant 0 : i32
    %c0_i32_0 = arith.constant 0 : i32
    %c0_i32_1 = arith.constant 0 : i32
    return %arg0, %c0_i32, %c0_i32_0 : i32, i32, i32
  }
}

</mosaic_0001>

<bundles_post_ra>
// kernel: _lambda_.1
= control target key start
LH: loop header
LB: loop body
LE: loop exit
PB: predicated region body
PF: predicated region fallthrough
CT: control target
= control target key end

     0   :  { %12 = vsyncpa [#allocation7], 0  ;;  %s3423_s0 = inlined_call_operand.hbm [shape: f32[2,4,2,16,16], index: 0, kind: input, shape index: {}]   ;;  %s3424_s1 = inlined_call_operand.hbm [shape: f32[1,384], index: 1, kind: input, shape index: {}]   ;;  %s3425_s2 = inlined_call_operand.hbm [shape: f32[24,72], index: 2, kind: input, shape index: {}]   ;;  %s3426_s3 = inlined_call_operand.hbm [shape: f32[24,1], index: 3, kind: input, shape index: {}]   ;;  %s3427_s4 = inlined_call_operand.hbm [shape: f32[72,96], index: 4, kind: input, shape index: {}]   ;;  %s3428_s5 = inlined_call_operand.vmem [shape: f32[2,1,384], index: 5, kind: output, shape index: {0}]   ;;  %s3429_s6 = inlined_call_operand.vmem [shape: f32[2,72,384], index: 6, kind: output, shape index: {1}]  }
   0x1   :  { %14 = vsyncpa [#allocation7 + $0x1], 0 }
   0x2   :  { %15 = vsyncpa [#allocation9], 0 }
   0x3   :  { %16 = vsyncpa [#allocation12], 0  ;;  %s2631_s21 = smov 0   ;;  %s2633_s22 = smov 0  }
   0x4   :  { %s2635_s23 = smov 0   ;;  %s2637_s24 = smov 0  }
   0x5 LB: > { %s2650_s25 = sadd.s32 4294967295, %s2559_s24   ;;  %p42_p0 = scmp.ne.s32.totalorder %s2551_s22, %s2547_s21  ;;  %s2559_s24 = sphi %s2637_s24, %s3447_s24   ;;  %s2555_s23 = sphi %s2635_s23, %s3446_s23   ;;  %s2551_s22 = sphi %s2633_s22, %s3445_s22   ;;  %s2547_s21 = sphi %s2631_s21, %s3444_s21  }
   0x6   : > { %p3430_p1 = scmp.eq.s32.totalorder %s2650_s25, 0  ;;  %p1876_p2 = scmp.ge.s32.totalorder %s2559_s24, 1 }
   0x7   : > { %p189_p3 = scmp.lt.s32.totalorder %s2559_s24, 3  ;;  %s2561_s28 = smov [#allocation8]  }
   0x8   : > { %p2658_p4 = por %p3430_p1, %p42_p0  ;;  %s202_s29 = sshll.u32 %s2561_s28, 4  ;;  %s203_s29 = int_to_ptr.vmem [resolvable:$true] %s202_s29 }
   0x9   : > { %p2662_p5 = pnand %p1876_p2, %p189_p3  ;;  %s2562_s7 = smov [#allocation11]  }
   0xa   : > { %s3433_s26 = scalar_select %p2658_p4, 1, 0 }
   0xb   : > { %s3434_s27 = scalar_select %p2662_p5, 1, 0 }
   0xc   : > { %p2120_p6 = pneg %p2662_p5  ;;  %s225_s8 = sshll.u32 %s2562_s7, 4  ;;  %s2674_s8 = int_to_ptr.vmem [resolvable:$true] %s225_s8 }
   0xd   : > { %s2563_s9 = smov [#allocation10]   ;;  %s2375_s13 = scalar_lea.hbm %s3424_s1, 48 }
   0xe   : > { %p2670_p7 = pnand %p2120_p6, %p3430_p1  ;;  %s2676_s10 = sshll.u32 %s2563_s9, 4  ;;  %s213_s10 = int_to_ptr.vmem [resolvable:$true] %s2676_s10 }
   0xf   : > { %p2376_p8 = scmp.ne.s32.totalorder %s3424_s1, %s2375_s13  ;;  %p2382_p12 = scmp.lt.u32.totalorder %s2375_s13, %s3424_s1 }
  0x10   : > { %p2686_p9 = pneg %p2670_p7 }
  0x12   : > { %p2378_p10 = pnand %p2686_p9, %p2376_p8 }
  0x14   : > { %p2379_p11 = pneg %p2378_p10 }
  0x16   : > { %p2384_p13 = pnand %p2382_p12, %p2379_p11 }
  0x18   : > { %2387 = shalt.err (!%p2384_p13)
}
  0x19   : > { %s2388_s19 = scalar_lea.vmem %s203_s29, 48  ;;  %s2395_s20 = scalar_lea.vmem %s203_s29, 64 }
  0x1a   : > { %p2389_p0 = scmp.ne.s32.totalorder %s203_s29, %s2388_s19  ;;  %p2396_p6 = scmp.lt.s32.totalorder %s203_s29, %s203_s29 }
  0x1b   : > { %p2397_p1 = scmp.lt.s32.totalorder %s2395_s20, %s2388_s19 }
  0x1c   : > { %p2391_p2 = pnand %p2389_p0, %p2686_p9 }
  0x1d   : > { %p2398_p4 = por %p2397_p1, %p2396_p6 }
  0x1e   : > { %p2392_p3 = pneg %p2391_p2 }
  0x20   : > { %p2399_p5 = pnand %p2398_p4, %p2392_p3 }
  0x22   : > { %2402 = shalt.err (!%p2399_p5)
}
  0x23   : > { %2123 = dma.hbm_to_vmem [thread:$0]  (!%p2670_p7), %s3424_s1, 48, %s203_s29, [#allocation9]  }
  0x24   : > { %s2403_s11 = scalar_lea.hbm %s3426_s3, 384 }
  0x25   : > { %p2404_p8 = scmp.ne.s32.totalorder %s3426_s3, %s2403_s11  ;;  %p2410_p4 = scmp.lt.u32.totalorder %s2403_s11, %s3426_s3 }
  0x27   : > { %p2406_p10 = pnand %p2404_p8, %p2686_p9 }
  0x29   : > { %p2407_p1 = pneg %p2406_p10 }
  0x2b   : > { %p2412_p5 = pnand %p2410_p4, %p2407_p1 }
  0x2d   : > { %2415 = shalt.err (!%p2412_p5)
}
  0x2e   : > { %s2416_s29 = scalar_lea.vmem %s2674_s8, 384  ;;  %p2424_p0 = scmp.lt.s32.totalorder %s2674_s8, %s2674_s8 }
  0x2f   : > { %p2417_p11 = scmp.ne.s32.totalorder %s2674_s8, %s2416_s29  ;;  %p2425_p2 = scmp.lt.s32.totalorder %s2416_s29, %s2416_s29 }
  0x31   : > { %p2419_p12 = pnand %p2417_p11, %p2686_p9  ;;  %p2426_p3 = por %p2425_p2, %p2424_p0 }
  0x33   : > { %p2420_p13 = pneg %p2419_p12 }
  0x35   : > { %p2427_p6 = pnand %p2426_p3, %p2420_p13 }
  0x37   : > { %2430 = shalt.err (!%p2427_p6)
}
  0x38   : > { %s2564_s17 = smov 128   ;;  %s2565_s18 = smov 8  }
  0x39   : > { %2129 = dma.hbm_to_vmem [thread:$0]  (!%p2670_p7), %s3426_s3, 384, %s2674_s8, [#allocation12], %s2564_s17, %s2564_s17, %s2565_s18  }
  0x3a   : > { %s2431_s7 = scalar_lea.hbm %s3425_s2, 384 }
  0x3b   : > { %p2432_p8 = scmp.ne.s32.totalorder %s3425_s2, %s2431_s7  ;;  %p2438_p4 = scmp.lt.u32.totalorder %s2431_s7, %s3425_s2 }
  0x3d   : > { %p2434_p10 = pnand %p2432_p8, %p2686_p9 }
  0x3f   : > { %p2435_p1 = pneg %p2434_p10 }
  0x41   : > { %p2440_p5 = pnand %p2438_p4, %p2435_p1 }
  0x43   : > { %2443 = shalt.err (!%p2440_p5)
}
  0x44   : > { %s2444_s14 = scalar_lea.vmem %s213_s10, 384  ;;  %p2452_p0 = scmp.lt.s32.totalorder %s213_s10, %s213_s10 }
  0x45   : > { %p2445_p11 = scmp.ne.s32.totalorder %s213_s10, %s2444_s14  ;;  %p2453_p2 = scmp.lt.s32.totalorder %s2444_s14, %s2444_s14 }
  0x47   : > { %p2447_p12 = pnand %p2445_p11, %p2686_p9  ;;  %p2454_p3 = por %p2453_p2, %p2452_p0 }
  0x49   : > { %p2448_p13 = pneg %p2447_p12 }
  0x4b   : > { %p2455_p6 = pnand %p2454_p3, %p2448_p13 }
  0x4d   : > { %2458 = shalt.err (!%p2455_p6)
}
  0x4e   : > { %2126 = dma.hbm_to_vmem [thread:$0]  (!%p2670_p7), %s3425_s2, 384, %s213_s10, [#allocation9], %s2564_s17, %s2564_s17, %s2565_s18  }
  0x4f   : > { %s2566_s29 = smov [#allocation13]   ;;  %s2459_s28 = scalar_lea.hbm %s3427_s4, 1152 }
  0x50   : > { %s238_s19 = sshll.u32 %s2566_s29, 4  ;;  %p2460_p8 = scmp.ne.s32.totalorder %s3427_s4, %s2459_s28  ;;  %s239_s19 = int_to_ptr.vmem [resolvable:$true] %s238_s19 }
  0x51   : > { %p2466_p4 = scmp.lt.u32.totalorder %s2459_s28, %s3427_s4 }
  0x52   : > { %p2462_p10 = pnand %p2460_p8, %p2686_p9 }
  0x54   : > { %p2463_p1 = pneg %p2462_p10 }
  0x56   : > { %p2468_p5 = pnand %p2466_p4, %p2463_p1 }
  0x58   : > { %2471 = shalt.err (!%p2468_p5)
}
  0x59   : > { %s2472_s10 = scalar_lea.vmem %s239_s19, 1152  ;;  %p2480_p0 = scmp.lt.s32.totalorder %s239_s19, %s239_s19 }
  0x5a   : > { %p2473_p11 = scmp.ne.s32.totalorder %s239_s19, %s2472_s10  ;;  %p2481_p2 = scmp.lt.s32.totalorder %s2472_s10, %s2472_s10 }
  0x5c   : > { %p2475_p12 = pnand %p2473_p11, %p2686_p9  ;;  %p2482_p3 = por %p2481_p2, %p2480_p0 }
  0x5e   : > { %p2476_p13 = pneg %p2475_p12 }
  0x60   : > { %p2483_p6 = pnand %p2482_p3, %p2476_p13 }
  0x62   : > { %2486 = shalt.err (!%p2483_p6)
}
  0x63   : > { %2132 = dma.hbm_to_vmem [thread:$0]  (!%p2670_p7), %s3427_s4, 1152, %s239_s19, [#allocation12], %s2564_s17, %s2564_s17, %s2565_s18  }
  0x64   : > { %s2772_s16 = sadd.s32 1, %s2559_s24   ;;  %s29_s30 = sadd.s32 1, %s2555_s23 }
  0x65   : > { %s26_s8 = ssub.s32 %s2559_s24, %s2772_s16  ;;  %p36_p9 = scmp.ne.s32.totalorder %s2555_s23, %s2551_s22 }
  0x66   : > { %p27_p8 = scmp.eq.s32.totalorder %s26_s8, 0  ;;  %p37_p10 = scmp.eq.s32.totalorder %s2559_s24, 0 }
  0x67   : > { %p2141_p1 = scmp.lt.s32.totalorder %s2559_s24, 2  ;;  %s252_s15 = sand.u32 1, %s2555_s23  }
  0x68   : > { %s2783_s29 = scalar_select %p27_p8, %s2555_s23, %s29_s30  }
  0x69   : > { %p38_p4 = por %p37_p10, %p36_p9  ;;  %s1882_s20 = sshll.u32 %s252_s15, 7 }
  0x6a   : > { %s1918_s21 = sshll.u32 %s2559_s24, 11  ;;  %s256_s19 = scalar_lea.vmem [#allocation6], %s1882_s20 }
  0x6b   : > { %s2789_s9 = scalar_lea.hbm %s3423_s0, %s1918_s21  ;;  %s263_s11 = sshll.u32 %s256_s19, 4  ;;  %s2795_s11 = int_to_ptr.vmem [resolvable:$true] %s263_s11 }
  0x6c   : > { %p2791_p7 = pnand %p2141_p1, %p38_p4  ;;  %s2797_s24 = scalar_lea.sflag [#allocation7], %s252_s15 }
  0x6d   : > { %s2487_s10 = scalar_lea.hbm %s2789_s9, 2048  ;;  %s2492_s30 = scalar_lea.hbm %s3423_s0, 4096 }
  0x6e   : > { %p2488_p5 = scmp.ne.s32.totalorder %s2789_s9, %s2487_s10  ;;  %p2489_p11 = pneg %p2791_p7 }
  0x6f   : > { %p2493_p0 = scmp.lt.u32.totalorder %s2789_s9, %s3423_s0  ;;  %p2494_p2 = scmp.lt.u32.totalorder %s2492_s30, %s2487_s10 }
  0x70   : > { %p2490_p12 = pnand %p2489_p11, %p2488_p5  ;;  %p2496_p6 = scmp.lt.u32.totalorder %s2487_s10, %s2789_s9 }
  0x71   : > { %p2495_p3 = por %p2494_p2, %p2493_p0 }
  0x72   : > { %p2491_p13 = pneg %p2490_p12 }
  0x73   : > { %p2497_p9 = por %p2496_p6, %p2495_p3 }
  0x75   : > { %p2498_p8 = pnand %p2497_p9, %p2491_p13 }
  0x77   : > { %2501 = shalt.err (!%p2498_p8)
}
  0x78   : > { %s2502_s15 = scalar_lea.vmem %s2795_s11, 2048  ;;  %s2567_s21 = smov [#allocation6]  }
  0x79   : > { %p2503_p10 = scmp.ne.s32.totalorder %s2795_s11, %s2502_s15  ;;  %s2507_s28 = sshll.u32 %s2567_s21, 4  ;;  %s2508_s28 = int_to_ptr.vmem [resolvable:$false] %s2507_s28 }
  0x7a   : > { %s2509_s7 = scalar_lea.vmem %s2508_s28, 4096  ;;  %p2510_p5 = scmp.lt.s32.totalorder %s2795_s11, %s2508_s28 }
  0x7b   : > { %p2505_p1 = pnand %p2503_p10, %p2489_p11  ;;  %p2511_p12 = scmp.lt.s32.totalorder %s2509_s7, %s2502_s15 }
  0x7d   : > { %p2506_p4 = pneg %p2505_p1  ;;  %p2512_p0 = por %p2511_p12, %p2510_p5 }
  0x7f   : > { %p2513_p2 = pnand %p2512_p0, %p2506_p4 }
  0x81   : > { %2516 = shalt.err (!%p2513_p2)
}
  0x82   : > { %2136 = dma.hbm_to_vmem [thread:$0]  (!%p2791_p7), %s2789_s9, 2048, %s2795_s11, %s2797_s24, %s2564_s17, %s2564_s17, %s2565_s18  }
  0x83   : > { %p3438_p11 = scmp.ne.s32.totalorder %s3434_s27, 0 }
  0x84   : > { %s277_s19 = sand.u32 (!%p3438_p11), 1, %s2551_s22   ;;  %p3439_p13 = scmp.ne.s32.totalorder (!%p3438_p11), %s3433_s26, 0 }
  0x85   : > { %275 = sbr.rel (%p3438_p11) target bundleno = 1097 (0x449), region = 40  ;;  %s1886_s10 = sshll.u32 (!%p3438_p11), %s277_s19, 7 }
  0x86   : > { %s278_s13 = scalar_lea.sflag (!%p3438_p11), [#allocation7], %s277_s19  ;;  %s2831_s14 = scalar_lea.vmem (!%p3438_p11), [#allocation6], %s1886_s10 }
  0x8c   : > { %2534 = dma.done.wait (%p3439_p13), %s278_s13, 2048  }
  0x8d   : > { %2536 = vsyncadd (%p3439_p13), %s278_s13, 4294965248  ;;  %p3440_p3 = scmp.eq.s32.totalorder %s2650_s25, 0 }
  0x8f   : > { %2538 = dma.done.wait (%p3440_p3), [#allocation9], 432   ;;  %p3441_p7 = pmov %p3440_p3 }
  0x90   : > { %p3442_p6 = pmov %p3440_p3 }
  0x91   : > { %2540 = vsyncadd (%p3441_p7), [#allocation9], 4294966864 }
  0x92   : > { %2542 = dma.done.wait (%p3442_p6), [#allocation12], 1536   ;;  %p3443_p9 = pmov %p3440_p3 }
  0x93   : > { %v2568_v0 = vmov 0.0   ;;  %vm381_vm0 = vcmask 1041409   ;;  %v339_v1 = vld [vmem:[%s2831_s14] sm:$0xff]  ;;  %v341_v2 = vld [vmem:[%s2831_s14 + $0x10] sm:$0xff]  ;;  %vm384_vm1 = vcmask 1042434   ;;  %vm387_vm2 = vcmask 1043459  }
  0x94   : > { %2544 = vsyncadd (%p3443_p9), [#allocation12], 4294965760  ;;  %371 = vst [vmem:[#allocation2] sm:$0xff] %v2568_v0  ;;  %986 = vmatprep.mubr.f32.mxu0 %v2568_v0  ;;  %v343_v3 = vld [vmem:[%s2831_s14 + $0x20] sm:$0xff]  ;;  %vm390_vm3 = vcmask 1044484   ;;  %v345_v4 = vld [vmem:[%s2831_s14 + $0x30] sm:$0xff]  ;;  %v355_v7 = vadd.f32 %v341_v2, %v339_v1 }
  0x95   : > { %372 = vst [vmem:[#allocation2 + $0x8] sm:$0xff] %v2568_v0  ;;  %373 = vst [vmem:[#allocation2 + $0x10] sm:$0xff] %v2568_v0  ;;  %v347_v5 = vld [vmem:[%s2831_s14 + $0x40] sm:$0xff]  ;;  %v349_v6 = vld [vmem:[%s2831_s14 + $0x50] sm:$0xff]  ;;  %vm393_vm4 = vcmask 1045509   ;;  %v2857_v8 = vrot.slane %v2568_v0, 2  ;;  %v357_v13 = vadd.f32 %v345_v4, %v343_v3 }
  0x96   : > { %374 = vst [vmem:[#allocation2 + $0x18] sm:$0xff] %v2568_v0  ;;  %v2860_v9 = vrot.slane %v2568_v0, 1  ;;  %v2863_v10 = vrot.slane %v2568_v0, 7  ;;  %v351_v11 = vld [vmem:[%s2831_s14 + $0x60] sm:$0xff]  ;;  %v353_v12 = vld [vmem:[%s2831_s14 + $0x70] sm:$0xff]  ;;  %v359_v14 = vadd.f32 %v349_v6, %v347_v5  ;;  %vm396_vm5 = vcmask 1046534  }
  0x97   : > { %v2868_v15 = vrot.slane %v2568_v0, 4  ;;  %v2871_v16 = vrot.slane %v2568_v0, 3  ;;  %v340_v17 = vld [vmem:[%s2831_s14 + $0x8] sm:$0xff]  ;;  %v361_v18 = vadd.f32 %v353_v12, %v351_v11  ;;  %v2874_v19 = vmul.f32 0.5, %v355_v7  ;;  %v342_v20 = vld [vmem:[%s2831_s14 + $0x18] sm:$0xff]  ;;  %s2569_s26 = smov 127  }
  0x98   : > { %vm399_vm6 = vcmask 1047559   ;;  %v344_v21 = vld [vmem:[%s2831_s14 + $0x28] sm:$0xff]  ;;  %v346_v22 = vld [vmem:[%s2831_s14 + $0x38] sm:$0xff]  ;;  %v2880_v23 = vrot.slane %v2568_v0, 5  ;;  %v2883_v24 = vrot.slane %v2568_v0, 6  ;;  %v2885_v25 = vmul.f32 0.5, %v357_v13 }
  0x99   : > { %v2887_v26 = vmul.f32 0.5, %v359_v14  ;;  %v348_v27 = vld [vmem:[%s2831_s14 + $0x48] sm:$0xff]  ;;  %v350_v28 = vld [vmem:[%s2831_s14 + $0x58] sm:$0xff]  ;;  %v356_v29 = vadd.f32 %v342_v20, %v340_v17  ;;  %v358_v30 = vadd.f32 %v346_v22, %v344_v21  ;;  %v2891_v31 = vmul.f32 0.5, %v361_v18  ;;  %s2570_s27 = smov 19   ;;  %s2571_s17 = smov 17  }
  0x9a   : > { %v486_v32 = vrot.slane %v2874_v19, 6  ;;  %v504_v33 = vrot.slane %v2874_v19, 7  ;;  %v352_v34 = vld [vmem:[%s2831_s14 + $0x68] sm:$0xff]  ;;  %v354_v35 = vld [vmem:[%s2831_s14 + $0x78] sm:$0xff]  ;;  %v360_v36 = vadd.f32 %v350_v28, %v348_v27  ;;  %v487_v37 = vrot.slane %v2885_v25, 5  ;;  %s2572_s18 = smov 35  }
  0x9b   : > { %v489_v38 = vrot.slane %v2887_v26, 4  ;;  %v380_v39 = vrot.slane %v2885_v25, 7  ;;  %v383_v40 = vrot.slane %v2887_v26, 6  ;;  %v491_v41 = vrot.slane %v2891_v31, 3  ;;  %s2573_s9 = smov 37   ;;  %s2574_s11 = smov 53  }
  0x9c   : > { %v386_v42 = vrot.slane %v2891_v31, 5  ;;  %v505_v43 = vrot.slane %v2885_v25, 6  ;;  %v507_v44 = vrot.slane %v2887_v26, 5  ;;  %v488_v45 = vsel %vm381_vm0, %v487_v37, %v486_v32  ;;  %s2575_s12 = smov 55   ;;  %s2576_s24 = smov 71  }
  0x9d   : > { %v382_v46 = vsel %vm381_vm0, %v380_v39, %v2874_v19  ;;  %v509_v47 = vrot.slane %v2891_v31, 4  ;;  %v362_v48 = vadd.f32 %v354_v35, %v352_v34  ;;  %v490_v49 = vsel %vm384_vm1, %v489_v38, %v488_v45  ;;  %s2577_s30 = smov 73   ;;  %s2578_s8 = smov 89  }
  0x9e   : > { %v385_v50 = vsel %vm384_vm1, %v383_v40, %v382_v46  ;;  %v506_v51 = vsel %vm381_vm0, %v505_v43, %v504_v33  ;;  %v2912_v52 = vmul.f32 0.5, %v356_v29  ;;  %v492_v53 = vsel %vm387_vm2, %v491_v41, %v490_v49  ;;  %s2579_s20 = smov 125   ;;  %s2580_s15 = smov 91  }
  0x9f   : > { %v388_v54 = vsel %vm387_vm2, %v386_v42, %v385_v50  ;;  %v508_v55 = vsel %vm384_vm1, %v507_v44, %v506_v51  ;;  %v2917_v56 = vmul.f32 0.5, %v358_v30  ;;  %v493_v57 = vsel %vm390_vm3, %v2857_v8, %v492_v53  ;;  %s2581_s21 = smov 107   ;;  %s2582_s28 = smov 15  }
  0xa0   : > { %v391_v58 = vsel %vm390_vm3, %v2868_v15, %v388_v54  ;;  %v510_v59 = vsel %vm387_vm2, %v509_v47, %v508_v55  ;;  %v2924_v60 = vmul.f32 0.5, %v360_v36  ;;  %v494_v61 = vsel %vm393_vm4, %v2860_v9, %v493_v57  ;;  %s2583_s7 = smov 109   ;;  %s2584_s19 = smov 33  }
  0xa1   : > { %v394_v62 = vsel %vm393_vm4, %v2871_v16, %v391_v58  ;;  %v511_v63 = vsel %vm390_vm3, %v2871_v16, %v510_v59  ;;  %v2932_v1 = vmul.f32 0.5, %v362_v48  ;;  %v495_v2 = vsel %vm396_vm5, 0.0, %v494_v61  ;;  %s2585_s10 = smov 126   ;;  %s2586_s13 = smov 110  }
  0xa2   : > { %v397_v3 = vsel %vm396_vm5, %v2857_v8, %v394_v62  ;;  %v512_v4 = vsel %vm393_vm4, %v2857_v8, %v511_v63  ;;  %v524_v5 = vrot.slane %v2917_v56, 7  ;;  %v496_v6 = vsel %vm399_vm6, %v2863_v10, %v495_v2  ;;  %s2588_s14 = smov 92   ;;  %p330_p8 = scmp.lt.s32.totalorder %s2650_s25, 1 }
  0xa3   : > { %v400_v7 = vsel %vm399_vm6, %v2860_v9, %v397_v3  ;;  %v513_v11 = vsel %vm396_vm5, %v2860_v9, %v512_v4  ;;  %v526_v12 = vrot.slane %v2924_v60, 6  ;;  %497 = vrot.lane.b32.xlu0 %v496_v6, %s2569_s26  ;;  %v528_v17 = vrot.slane %v2932_v1, 5 }
  0xa4   : > { %401 = vrot.lane.b32.xlu1 %v400_v7, %s2570_s27  ;;  %v514_v13 = vsel %vm399_vm6, 0.0, %v513_v11  ;;  %v525_v14 = vsel %vm381_vm0, %v524_v5, %v2912_v52  ;;  %v406_v18 = vrot.slane %v2874_v19, 1  ;;  %v408_v21 = vrot.slane %v2887_v26, 7  ;;  %s3449_s25 = smov (!%p330_p8, %s2650_s25), 1 }
  0xa5   : > { %v527_v20 = vsel %vm384_vm1, %v526_v12, %v525_v14  ;;  %v410_v22 = vrot.slane %v2891_v31, 6  ;;  %v539_v27 = vrot.slane %v2912_v52, 1  ;;  %v541_v30 = vrot.slane %v2924_v60, 7 }
  0xa6   : > { %v529_v28 = vsel %vm387_vm2, %v528_v17, %v527_v20  ;;  %v407_v29 = vsel %vm381_vm0, %v2885_v25, %v406_v18  ;;  %v543_v32 = vrot.slane %v2932_v1, 6  ;;  %v422_v36 = vrot.slane %v2874_v19, 2 }
  0xa7   : > { %v530_v33 = vsel %vm390_vm3, %v2868_v15, %v529_v28  ;;  %v409_v34 = vsel %vm384_vm1, %v408_v21, %v407_v29  ;;  %v540_v35 = vsel %vm381_vm0, %v2917_v56, %v539_v27  ;;  %515 = vrot.lane.b32.xlu0 %v514_v13, %s2571_s17  ;;  %v423_v40 = vrot.slane %v2885_v25, 1  ;;  %s2589_s17 = smov 108  }
  0xa8   : > { %v531_v37 = vsel %vm393_vm4, %v2871_v16, %v530_v33  ;;  %v411_v38 = vsel %vm387_vm2, %v410_v22, %v409_v34  ;;  %v542_v39 = vsel %vm384_vm1, %v541_v30, %v540_v35  ;;  %v426_v44 = vrot.slane %v2891_v31, 7 }
  0xa9   : > { %v532_v41 = vsel %vm396_vm5, %v2857_v8, %v531_v37  ;;  %v413_v42 = vsel %vm390_vm3, %v2880_v23, %v411_v38  ;;  %v544_v43 = vsel %vm387_vm2, %v543_v32, %v542_v39  ;;  %v424_v48 = vsel %vm381_vm0, %v423_v40, %v422_v36 }
  0xaa   : > { %v533_v45 = vsel %vm399_vm6, %v2860_v9, %v532_v41  ;;  %v414_v46 = vsel %vm393_vm4, %v2868_v15, %v413_v42  ;;  %v545_v47 = vsel %vm390_vm3, %v2880_v23, %v544_v43  ;;  %v425_v51 = vsel %vm384_vm1, %v2887_v26, %v424_v48 }
  0xab   : > { %534 = vrot.lane.b32.xlu1 %v533_v45, %s2572_s18  ;;  %v415_v49 = vsel %vm396_vm5, %v2871_v16, %v414_v46  ;;  %v546_v50 = vsel %vm393_vm4, %v2868_v15, %v545_v47  ;;  %v554_v53 = vrot.slane %v2912_v52, 2  ;;  %v427_v57 = vsel %vm387_vm2, %v426_v44, %v425_v51  ;;  %s2591_s18 = smov 90  }
  0xac   : > { %v416_v54 = vsel %vm399_vm6, %v2857_v8, %v415_v49  ;;  %v547_v55 = vsel %vm396_vm5, %v2871_v16, %v546_v50  ;;  %v555_v58 = vrot.slane %v2917_v56, 1  ;;  %v429_v61 = vsel %vm390_vm3, %v2883_v24, %v427_v57 }
  0xad   : > { %417 = vrot.lane.b32.xlu0 %v416_v54, %s2573_s9  ;;  %v548_v59 = vsel %vm399_vm6, %v2857_v8, %v547_v55  ;;  %v558_v62 = vrot.slane %v2932_v1, 7  ;;  %v438_v63 = vrot.slane %v2874_v19, 3  ;;  %v430_v2 = vsel %vm393_vm4, %v2880_v23, %v429_v61  ;;  %s2100_s9 = smul.u32 3, %s3449_s25 }
  0xae   : > { %v556_v3 = vsel %vm381_vm0, %v555_v58, %v554_v53  ;;  %v439_v4 = vrot.slane %v2885_v25, 2  ;;  %v441_v5 = vrot.slane %v2887_v26, 1  ;;  %v431_v6 = vsel %vm396_vm5, %v2868_v15, %v430_v2 }
  0xaf   : > { %549 = vrot.lane.b32.xlu1 %v548_v59, %s2574_s11  ;;  %v557_v7 = vsel %vm384_vm1, %v2924_v60, %v556_v3  ;;  %v569_v11 = vrot.slane %v2912_v52, 3  ;;  %v570_v12 = vrot.slane %v2917_v56, 2  ;;  %v432_v13 = vsel %vm399_vm6, %v2871_v16, %v431_v6 }
  0xb0   : > { %v559_v14 = vsel %vm387_vm2, %v558_v62, %v557_v7  ;;  %v440_v17 = vsel %vm381_vm0, %v439_v4, %v438_v63  ;;  %v572_v18 = vrot.slane %v2924_v60, 1  ;;  %v600_v27 = vrot.slane %v2912_v52, 5 }
  0xb1   : > { %433 = vrot.lane.b32.xlu0 %v432_v13, %s2575_s12  ;;  %v560_v20 = vsel %vm390_vm3, %v2883_v24, %v559_v14  ;;  %v442_v21 = vsel %vm384_vm1, %v441_v5, %v440_v17  ;;  %v571_v22 = vsel %vm381_vm0, %v570_v12, %v569_v11  ;;  %v601_v32 = vrot.slane %v2917_v56, 4 }
  0xb2   : > { %v561_v28 = vsel %vm393_vm4, %v2880_v23, %v560_v20  ;;  %v443_v29 = vsel %vm387_vm2, %v2891_v31, %v442_v21  ;;  %v573_v30 = vsel %vm384_vm1, %v572_v18, %v571_v22  ;;  %v603_v36 = vrot.slane %v2924_v60, 3 }
  0xb3   : > { %v562_v33 = vsel %vm396_vm5, %v2868_v15, %v561_v28  ;;  %v445_v34 = vsel %vm390_vm3, %v2863_v10, %v443_v29  ;;  %v574_v35 = vsel %vm387_vm2, %v2932_v1, %v573_v30  ;;  %v602_v40 = vsel %vm381_vm0, %v601_v32, %v600_v27 }
  0xb4   : > { %v563_v37 = vsel %vm399_vm6, %v2871_v16, %v562_v33  ;;  %v446_v38 = vsel %vm393_vm4, %v2883_v24, %v445_v34  ;;  %v575_v39 = vsel %vm390_vm3, %v2863_v10, %v574_v35  ;;  %v604_v43 = vsel %vm384_vm1, %v603_v36, %v602_v40 }
  0xb5   : > { %564 = vrot.lane.b32.xlu1 %v563_v37, %s2576_s24  ;;  %v447_v41 = vsel %vm396_vm5, %v2880_v23, %v446_v38  ;;  %v576_v42 = vsel %vm393_vm4, %v2883_v24, %v575_v39  ;;  %v605_v44 = vrot.slane %v2932_v1, 2  ;;  %v454_v47 = vrot.slane %v2874_v19, 4  ;;  %s333_s24 = scalar_lea.vmem %s3428_s5, %s2100_s9 }
  0xb6   : > { %v448_v45 = vsel %vm399_vm6, %v2868_v15, %v447_v41  ;;  %v577_v46 = vsel %vm396_vm5, %v2880_v23, %v576_v42  ;;  %v455_v48 = vrot.slane %v2885_v25, 3  ;;  %v457_v51 = vrot.slane %v2887_v26, 2 }
  0xb7   : > { %449 = vrot.lane.b32.xlu0 %v448_v45, %s2577_s30  ;;  %v578_v49 = vsel %vm399_vm6, %v2868_v15, %v577_v46  ;;  %v606_v50 = vsel %vm387_vm2, %v605_v44, %v604_v43  ;;  %v459_v53 = vrot.slane %v2891_v31, 1  ;;  %v584_v57 = vrot.slane %v2912_v52, 4  ;;  %s2595_s30 = smov 1  }
  0xb8   : > { %v607_v54 = vsel %vm390_vm3, %v2860_v9, %v606_v50  ;;  %v456_v55 = vsel %vm381_vm0, %v455_v48, %v454_v47  ;;  %v585_v58 = vrot.slane %v2917_v56, 3  ;;  %v587_v61 = vrot.slane %v2924_v60, 2 }
  0xb9   : > { %579 = vrot.lane.b32.xlu1 %v578_v49, %s2578_s8  ;;  %v608_v59 = vsel %vm393_vm4, 0.0, %v607_v54  ;;  %v458_v15 = vsel %vm384_vm1, %v457_v51, %v456_v55  ;;  %v589_v62 = vrot.slane %v2932_v1, 1  ;;  %v618_v4 = vrot.slane %v2912_v52, 6 }
  0xba   : > { %v609_v63 = vsel %vm396_vm5, %v2863_v10, %v608_v59  ;;  %v460_v2 = vsel %vm387_vm2, %v459_v53, %v458_v15  ;;  %v586_v3 = vsel %vm381_vm0, %v585_v58, %v584_v57  ;;  %v619_v11 = vrot.slane %v2917_v56, 5 }
  0xbb   : > { %v610_v5 = vsel %vm399_vm6, %v2883_v24, %v609_v63  ;;  %v461_v6 = vsel %vm390_vm3, 0.0, %v460_v2  ;;  %v588_v7 = vsel %vm384_vm1, %v587_v61, %v586_v3  ;;  %v621_v14 = vrot.slane %v2924_v60, 4 }
  0xbc   : > { %611 = vrot.lane.b32.xlu0 %v610_v5, %s2579_s20  ;;  %v462_v12 = vsel %vm393_vm4, %v2863_v10, %v461_v6  ;;  %v590_v13 = vsel %vm387_vm2, %v589_v62, %v588_v7  ;;  %v623_v17 = vrot.slane %v2932_v1, 3  ;;  %v620_v21 = vsel %vm381_vm0, %v619_v11, %v618_v4  ;;  %v895_v11 = vld [vmem:[#allocation11 + $0x8] sm:$0xff] }
  0xbd   : > { %v463_v18 = vsel %vm396_vm5, %v2883_v24, %v462_v12  ;;  %v591_v20 = vsel %vm390_vm3, 0.0, %v590_v13  ;;  %v470_v22 = vrot.slane %v2874_v19, 5  ;;  %v622_v29 = vsel %vm384_vm1, %v621_v14, %v620_v21  ;;  %v894_v12 = vld [vmem:[#allocation11] sm:$0xff]  ;;  %v896_v13 = vld [vmem:[#allocation11 + $0x10] sm:$0xff] }
  0xbe   : > { %v464_v27 = vsel %vm399_vm6, %v2880_v23, %v463_v18  ;;  %v592_v28 = vsel %vm393_vm4, %v2863_v10, %v591_v20  ;;  %v471_v30 = vrot.slane %v2885_v25, 4  ;;  %v624_v33 = vsel %vm387_vm2, %v623_v17, %v622_v29 }
  0xbf   : > { %465 = vrot.lane.b32.xlu1 %v464_v27, %s2580_s15  ;;  %v593_v32 = vsel %vm396_vm5, %v2883_v24, %v592_v28  ;;  %v473_v19 = vrot.slane %v2887_v26, 3  ;;  %v475_v34 = vrot.slane %v2891_v31, 2  ;;  %v625_v36 = vsel %vm390_vm3, %v2857_v8, %v624_v33 }
  0xc0   : > { %v594_v35 = vsel %vm399_vm6, %v2880_v23, %v593_v32  ;;  %v472_v25 = vsel %vm381_vm0, %v471_v30, %v470_v22  ;;  %v634_v37 = vrot.slane %v2912_v52, 7  ;;  %v626_v38 = vsel %vm393_vm4, %v2860_v9, %v625_v36 }
  0xc1   : > { %595 = vrot.lane.b32.xlu0 %v594_v35, %s2581_s21  ;;  %v474_v39 = vsel %vm384_vm1, %v473_v19, %v472_v25  ;;  %v635_v26 = vrot.slane %v2917_v56, 6  ;;  %v637_v31 = vrot.slane %v2924_v60, 5  ;;  %v627_v23 = vsel %vm396_vm5, 0.0, %v626_v38 }
  0xc2   : > { %v476_v40 = vsel %vm387_vm2, %v475_v34, %v474_v39  ;;  %v639_v41 = vrot.slane %v2932_v1, 4  ;;  %v628_v52 = vsel %vm399_vm6, %v2863_v10, %v627_v23  ;;  %vm502_vm7 = vcmask 121856  }
  0xc3   : > { %v477_v42 = vsel %vm390_vm3, %v2860_v9, %v476_v40  ;;  %v636_v43 = vsel %vm381_vm0, %v635_v26, %v634_v37  ;;  %629 = vrot.lane.b32.xlu1 %v628_v52, %s2582_s28  ;;  %vm404_vm8 = vcmask 285848   ;;  %vm518_vm9 = vcmask 269448  }
  0xc4   : > { %v478_v56 = vsel %vm393_vm4, 0.0, %v477_v42  ;;  %v638_v60 = vsel %vm384_vm1, %v637_v31, %v636_v43  ;;  %vm537_vm10 = vcmask 417048   ;;  %vm420_vm11 = vcmask 433448  }
  0xc5   : > { %v479_v44 = vsel %vm396_vm5, %v2863_v10, %v478_v56  ;;  %v640_v45 = vsel %vm387_vm2, %v639_v41, %v638_v60  ;;  %vm552_vm12 = vcmask 564648   ;;  %vm436_vm13 = vcmask 581048  }
  0xc6   : > { %v480_v1 = vsel %vm399_vm6, %v2883_v24, %v479_v44  ;;  %v641_v46 = vsel %vm390_vm3, %v2871_v16, %v640_v45  ;;  %vm567_vm14 = vcmask 712248   ;;  %vm452_vm15 = vcmask 728648  }
  0xc7   : > { %481 = vrot.lane.b32.xlu0 %v480_v1, %s2583_s7  ;;  %v642_v47 = vsel %vm393_vm4, %v2857_v8, %v641_v46  ;;  %vm582_vm0 = vcmask 859848   ;;  %vm616_vm1 = vcmask 105472   ;;  %vm468_vm2 = vcmask 876248  }
  0xc8   : > { %v643_v48 = vsel %vm396_vm5, %v2860_v9, %v642_v47  ;;  %vm598_vm3 = vcmask 1007448   ;;  %vm614_vm4 = vcmask 1048552   ;;  %vm632_vm5 = vcmask 253048  }
  0xc9   : > { %v644_v49 = vsel %vm399_vm6, 0.0, %v643_v48  ;;  %vm484_vm6 = vcmask 1023848   ;;  %v2587_v3 = vmov 0.0|0.0   ;;  %v2592_v7 = vmov 0  }
  0xca   : > { %645 = vrot.lane.b32.xlu1 %v644_v49, %s2584_s19  ;;  %2046 = vmatprep.subr.bf16.mxu1 %v2587_v3 }
  0xcb   : > { %2283 = vset.pattern.permute.xlu1 %v2592_v7  ;;  %2282 = vset.pattern.permute.xlu0 %v2592_v7 }
 0x115   : > { %v498_v10 = vpop.permute.xlu0 %497 }
 0x116   : > { %v402_v24 = vpop.permute.xlu1 %401  ;;  %503 = vst.msk [vmem:[#allocation2 + $0x8] sm:$0xff] %vm502_vm7, %v498_v10  ;;  %vm500_vm7 = vcmask 1048568  }
 0x117   : > { %405 = vst.msk [vmem:[#allocation2] sm:$0xff] %vm404_vm8, %v402_v24  ;;  %vm648_vm8 = vcmask 400648  }
 0x119   : > { %v516_v16 = vpop.permute.xlu0 %515 }
 0x11a   : > { %519 = vst.msk [vmem:[#allocation2 + $0x8] sm:$0xff] %vm518_vm9, %v516_v16  ;;  %vm2590_vm9 = vmmov 0  }
 0x11b   : > { %1970 = vmatprep.mubr.msk.f32.mxu1 %vm2590_vm9, %v2568_v0 }
 0x11d   : > { %v535_v50 = vpop.permute.xlu1 %534 }
 0x11e   : > { %538 = vst.msk [vmem:[#allocation2 + $0x8] sm:$0xff] %vm537_vm10, %v535_v50  ;;  %vm672_vm10 = vcmask 1039360  }
 0x11f   : > { %v418_v8 = vpop.permute.xlu0 %417 }
 0x120   : > { %421 = vst.msk [vmem:[#allocation2] sm:$0xff] %vm420_vm11, %v418_v8  ;;  %vm698_vm11 = vcmask 1031168  }
 0x121   : > { %v550_v9 = vpop.permute.xlu1 %549 }
 0x122   : > { %553 = vst.msk [vmem:[#allocation2 + $0x8] sm:$0xff] %vm552_vm12, %v550_v9  ;;  %vm724_vm12 = vcmask 900096  }
 0x123   : > { %v434_v51 = vpop.permute.xlu0 %433 }
 0x124   : > { %437 = vst.msk [vmem:[#allocation2] sm:$0xff] %vm436_vm13, %v434_v51  ;;  %vm750_vm13 = vcmask 891904  }
 0x127   : > { %v565_v53 = vpop.permute.xlu1 %564 }
 0x128   : > { %568 = vst.msk [vmem:[#allocation2 + $0x8] sm:$0xff] %vm567_vm14, %v565_v53  ;;  %vm776_vm14 = vcmask 883712  }
 0x129   : > { %v450_v54 = vpop.permute.xlu0 %449 }
 0x12a   : > { %453 = vst.msk [vmem:[#allocation2] sm:$0xff] %vm452_vm15, %v450_v54  ;;  %vm828_vm15 = vcmask 744448  }
 0x12b   : > { %v580_v55 = vpop.permute.xlu1 %579 }
 0x12c   : > { %583 = vst.msk [vmem:[#allocation2 + $0x8] sm:$0xff] %vm582_vm0, %v580_v55  ;;  %vm802_vm0 = vcmask 752640  }
 0x12e   : > { %v612_v57 = vpop.permute.xlu0 %611 }
 0x12f   : > { %617 = vst.msk [vmem:[#allocation2 + $0x10] sm:$0xff] %vm616_vm1, %v612_v57  ;;  %vm854_vm1 = vcmask 736256  }
 0x131   : > { %v466_v58 = vpop.permute.xlu1 %465 }
 0x132   : > { %469 = vst.msk [vmem:[#allocation2] sm:$0xff] %vm468_vm2, %v466_v58  ;;  %vm912_vm2 = vcmask 588800  }
 0x133   : > { %v596_v59 = vpop.permute.xlu0 %595 }
 0x134   : > { %599 = vst.msk [vmem:[#allocation2 + $0x8] sm:$0xff] %vm598_vm3, %v596_v59 }
 0x135   : > { %615 = vst.msk [vmem:[#allocation2 + $0x8] sm:$0xff] %vm614_vm4, %v612_v57  ;;  %v630_v15 = vpop.permute.xlu1 %629  ;;  %vm1212_vm4 = vcmask 154624  }
 0x136   : > { %633 = vst.msk [vmem:[#allocation2 + $0x10] sm:$0xff] %vm632_vm5, %v630_v15  ;;  %vm1288_vm5 = vcmask 146432  }
 0x139   : > { %v482_v61 = vpop.permute.xlu0 %481 }
 0x13a   : > { %485 = vst.msk [vmem:[#allocation2] sm:$0xff] %vm484_vm6, %v482_v61  ;;  %vm1364_vm6 = vcmask 7168  }
 0x13b   : > { %501 = vst.msk [vmem:[#allocation2] sm:$0xff] %vm500_vm7, %v498_v10  ;;  %vm1455_vm7 = vcmask 785408  }
 0x13c   : > { %v646_v62 = vpop.permute.xlu1 %645  ;;  %v3148_v5 = vld [vmem:[#allocation2 + $0x8] sm:$0xff] }
 0x13d   : > { %649 = vst.msk [vmem:[#allocation2 + $0x10] sm:$0xff] %vm648_vm8, %v646_v62 }
 0x142   : > { %v3139_v63 = vld [vmem:[#allocation2] sm:$0xff] }
 0x143   : > { %v2217_v2 = vpack.i.bf16 %v2568_v0, %v3139_v63 }
 0x144   : > { %v3146_v4 = vld [vmem:[#allocation2 + $0x10] sm:$0xff] }
 0x145   : > { %2218 = vrot.lane.b32.xlu0 %v2217_v2, %s2585_s10  ;;  %2213 = vrot.lane.b32.xlu1 %v2217_v2, %s2569_s26  ;;  %v2252_v6 = vpack.i.bf16 %v3146_v4, %v3148_v5 }
 0x149   : > { %2228 = vrot.lane.b32.xlu0 %v2217_v2, %s2583_s7  ;;  %2223 = vrot.lane.b32.xlu1 %v2217_v2, %s2586_s13 }
 0x14d   : > { %2238 = vrot.lane.b32.xlu0 %v2217_v2, %s2588_s14  ;;  %2233 = vrot.lane.b32.xlu1 %v2217_v2, %s2589_s17 }
 0x151   : > { %2253 = vrot.lane.b32.xlu1 %v2252_v6, %s2586_s13  ;;  %2243 = vrot.lane.b32.xlu0 %v2252_v6, %s2569_s26  ;;  %s2593_s26 = smov 18  }
 0x155   : > { %2263 = vrot.lane.b32.xlu1 %v2252_v6, %s2589_s17  ;;  %2248 = vrot.lane.b32.xlu0 %v2252_v6, %s2585_s10 }
 0x159   : > { %2273 = vrot.lane.b32.xlu1 %v2252_v6, %s2580_s15  ;;  %2258 = vrot.lane.b32.xlu0 %v2252_v6, %s2583_s7 }
 0x15d   : > { %2278 = vrot.lane.b32.xlu1 %v2217_v2, %s2580_s15  ;;  %2268 = vrot.lane.b32.xlu0 %v2252_v6, %s2588_s14 }
 0x161   : > { %850 = vrot.lane.b32.xlu1 %v3146_v4, %s2591_s18  ;;  %848 = vrot.lane.b32.xlu0 %v3148_v5, %s2591_s18 }
 0x165   : > { %852 = vrot.lane.b32.xlu1 %v2568_v0, %s2591_s18  ;;  %846 = vrot.lane.b32.xlu0 %v3139_v63, %s2591_s18 }
 0x169   : > { %904 = vperm.xlu1 %2283, %v895_v11   ;;  %899 = vperm.xlu0 %2282, %v894_v12  }
 0x16d   : > { %909 = vperm.xlu1 %2283, %v896_v13   ;;  %2285 = vrot.lane.b32.xlu0 %v2568_v0, %s2570_s27 }
 0x171   : > { %2290 = vrot.lane.b32.xlu0 %v2568_v0, %s2593_s26 }
 0x1b7   : > { %v2219_v14 = vpop.permute.xlu0 %2218  ;;  %v2214_v17 = vpop.permute.xlu1 %2213 }
 0x1b8   : > { %v2216_v29 = vunpack.i.h.bf16 %v2214_v17  ;;  %v2215_v30 = vunpack.i.l.bf16 %v2214_v17  ;;  %v2221_v19 = vunpack.i.h.bf16 %v2219_v14  ;;  %v2220_v34 = vunpack.i.l.bf16 %v2219_v14 }
 0x1bb   : > { %v3162_v18 = vpop.permute.xlu0 %2228  ;;  %v2224_v20 = vpop.permute.xlu1 %2223 }
 0x1bc   : > { %v2226_v25 = vunpack.i.h.bf16 %v2224_v20  ;;  %v2225_v26 = vunpack.i.l.bf16 %v2224_v20  ;;  %v2231_v44 = vunpack.i.h.bf16 %v3162_v18  ;;  %v2230_v53 = vunpack.i.l.bf16 %v3162_v18 }
 0x1bf   : > { %v3164_v21 = vpop.permute.xlu0 %2238  ;;  %v2234_v22 = vpop.permute.xlu1 %2233 }
 0x1c0   : > { %v2236_v47 = vunpack.i.h.bf16 %v2234_v22  ;;  %v2235_v24 = vunpack.i.l.bf16 %v2234_v22  ;;  %v2240_v20 = vunpack.i.l.bf16 %v3164_v21 }
 0x1c3   : > { %v2244_v27 = vpop.permute.xlu0 %2243  ;;  %v2254_v28 = vpop.permute.xlu1 %2253 }
 0x1c4   : > { %v2246_v32 = vunpack.i.h.bf16 %v2244_v27  ;;  %v2245_v33 = vunpack.i.l.bf16 %v2244_v27  ;;  %v2256_v35 = vunpack.i.h.bf16 %v2254_v28  ;;  %v2255_v36 = vunpack.i.l.bf16 %v2254_v28 }
 0x1c6   : > { %v674_v37 = vsel %vm672_vm10, %v2245_v33, %v2246_v32  ;;  %v675_v38 = vsel %vm672_vm10, %v2246_v32, %v2216_v29  ;;  %v673_v39 = vsel %vm672_vm10, %v2215_v30, %v2245_v33  ;;  %v726_v45 = vsel %vm724_vm12, %v2255_v36, %v2256_v35 }
 0x1c7   : > { %v2249_v31 = vpop.permute.xlu0 %2248  ;;  %v2264_v23 = vpop.permute.xlu1 %2263  ;;  %v2030_v40 = vpack.c.bf16 %v674_v37, %v3148_v5  ;;  %v2047_v41 = vpack.c.bf16 %v675_v38, %v3146_v4  ;;  %v2032_v52 = vpack.c.bf16 %v673_v39, %v3139_v63  ;;  %v727_v1 = vsel %vm724_vm12, %v2256_v35, %v2226_v25  ;;  %v864_v38 = vld [vmem:[#allocation10] sm:$0xff] }
 0x1c8   : > { %v2251_v42 = vunpack.i.h.bf16 %v2249_v31  ;;  %v2250_v43 = vunpack.i.l.bf16 %v2249_v31  ;;  %v2266_v56 = vunpack.i.h.bf16 %v2264_v23  ;;  %v2265_v60 = vunpack.i.l.bf16 %v2264_v23  ;;  %v865_v31 = vld [vmem:[#allocation10 + $0x8] sm:$0xff]  ;;  %v866_v23 = vld [vmem:[#allocation10 + $0x10] sm:$0xff] }
 0x1c9   : > { %2031 = vmatprep.subr.bf16.mxu0 %v2030_v40  ;;  %2048 = vmatpush3.bf16.msra.mxu1 %v2047_v41  ;;  %v725_v46 = vsel %vm724_vm12, %v2225_v26, %v2255_v36  ;;  %v2241_v4 = vunpack.i.h.bf16 %v3164_v21  ;;  %v1087_v40 = vlaneseq }
 0x1ca   : > { %2033 = vmatpush1.bf16.msra.mxu0 %v2032_v52  ;;  %2049 = vmatprep.subr.bf16.mxu1 %v2587_v3  ;;  %v700_v48 = vsel %vm698_vm11, %v2250_v43, %v2251_v42  ;;  %v701_v49 = vsel %vm698_vm11, %v2251_v42, %v2221_v19  ;;  %v699_v10 = vsel %vm698_vm11, %v2220_v34, %v2250_v43  ;;  %v1085_v42 = vld [vmem:[#allocation8] sm:$0x7] }
 0x1cb   : > { %v2259_v16 = vpop.permute.xlu0 %2258  ;;  %v2274_v50 = vpop.permute.xlu1 %2273  ;;  %v2034_v8 = vpack.c.bf16 %v726_v45, %v700_v48  ;;  %v2050_v9 = vpack.c.bf16 %v727_v1, %v701_v49  ;;  %v2036_v51 = vpack.c.bf16 %v725_v46, %v699_v10  ;;  %v778_v57 = vsel %vm776_vm14, %v2265_v60, %v2266_v56 }
 0x1cc   : > { %v2261_v54 = vunpack.i.h.bf16 %v2259_v16  ;;  %v2260_v55 = vunpack.i.l.bf16 %v2259_v16  ;;  %v2276_v58 = vunpack.i.h.bf16 %v2274_v50  ;;  %v2275_v59 = vunpack.i.l.bf16 %v2274_v50 }
 0x1cd   : > { %2035 = vmatprep.subr.bf16.mxu0 %v2034_v8  ;;  %2051 = vmatpush3.bf16.msra.mxu1 %v2050_v9  ;;  %v779_v15 = vsel %vm776_vm14, %v2266_v56, %v2236_v47  ;;  %v777_v61 = vsel %vm776_vm14, %v2235_v24, %v2265_v60  ;;  %v1088_v41 = vshrl.u32 %v1087_v40, 7  ;;  %vm1140_vm3 = vcmp.lt.s32.totalorder %v1087_v40, 384 }
 0x1ce   : > { %2037 = vmatpush1.bf16.msra.mxu0 %v2036_v51  ;;  %2052 = vmatprep.subr.bf16.mxu1 %v2587_v3  ;;  %v752_v62 = vsel %vm750_vm13, %v2260_v55, %v2261_v54  ;;  %v753_v63 = vsel %vm750_vm13, %v2261_v54, %v2231_v44  ;;  %v751_v2 = vsel %vm750_vm13, %v2230_v53, %v2260_v55  ;;  %v2594_v53 = vmov 1966171168  }
 0x1cf   : > { %v2269_v5 = vpop.permute.xlu0 %2268  ;;  %v2279_v6 = vpop.permute.xlu1 %2278  ;;  %v2038_v7 = vpack.c.bf16 %v778_v57, %v752_v62  ;;  %v2053_v11 = vpack.c.bf16 %v779_v15, %v753_v63  ;;  %v2040_v12 = vpack.c.bf16 %v777_v61, %v751_v2  ;;  %v830_v22 = vsel %vm828_vm15, %v2275_v59, %v2276_v58 }
 0x1d0   : > { %v2271_v13 = vunpack.i.h.bf16 %v2269_v5  ;;  %v2270_v14 = vunpack.i.l.bf16 %v2269_v5  ;;  %v2281_v17 = vunpack.i.h.bf16 %v2279_v6  ;;  %v2280_v18 = vunpack.i.l.bf16 %v2279_v6 }
 0x1d1   : > { %2039 = vmatprep.subr.bf16.mxu0 %v2038_v7  ;;  %2054 = vmatpush3.bf16.msra.mxu1 %v2053_v11  ;;  %v1097_v52 = vsub.s32 2, %v1088_v41  ;;  %v1089_v43 = vsub.s32 0, %v1088_v41  ;;  %v1093_v56 = vsub.s32 1, %v1088_v41  ;;  %v1116_v54 = vunpack.c.l.s4 %v2594_v53 }
 0x1d2   : > { %2041 = vmatpush1.bf16.msra.mxu0 %v2040_v12  ;;  %2055 = vmatprep.subr.bf16.mxu1 %v2587_v3  ;;  %v804_v27 = vsel %vm802_vm0, %v2270_v14, %v2271_v13  ;;  %v805_v28 = vsel %vm802_vm0, %v2271_v13, %v2241_v4  ;;  %v831_v29 = vsel %vm828_vm15, %v2276_v58, %v2281_v17 }
 0x1d3   : > { %v849_v30 = vpop.permute.xlu0 %848  ;;  %v851_v32 = vpop.permute.xlu1 %850  ;;  %v2042_v33 = vpack.c.bf16 %v830_v22, %v804_v27  ;;  %v2056_v19 = vpack.c.bf16 %v831_v29, %v805_v28  ;;  %v803_v21 = vsel %vm802_vm0, %v2240_v20, %v2270_v14  ;;  %v829_v34 = vsel %vm828_vm15, %v2280_v18, %v2275_v59 }
 0x1d4   : > { %v2044_v35 = vpack.c.bf16 %v829_v34, %v803_v21  ;;  %v856_v36 = vsel %vm854_vm1, %v849_v30, %v851_v32  ;;  %v1098_v44 = vrot.slane %v1085_v42, %v1097_v52  ;;  %v1090_v1 = vrot.slane %v1085_v42, %v1089_v43 }
 0x1d5   : > { %2043 = vmatprep.subr.bf16.mxu0 %v2042_v33  ;;  %2057 = vmatpush3.bf16.msra.mxu1 %v2056_v19  ;;  %v1094_v49 = vrot.slane %v1085_v42, %v1093_v56  ;;  %v1117_v11 = vunpack.c.0.s8 %v1116_v54  ;;  %v3257_v19 = vld [vmem:[#allocation2 + $0x18] sm:$0xff] }
 0x1d6   : > { %2045 = vmatpush1.bf16.msra.mxu0 %v2044_v35  ;;  %1968 = vmatprep.subr.mxu1 %v2568_v0 }
 0x1d7   : > { %v847_v25 = vpop.permute.xlu0 %846  ;;  %v853_v37 = vpop.permute.xlu1 %852  ;;  %938 = vmatprep.subr.mxu0 %v856_v36 }
 0x1d8   : > { %v857_v39 = vsel %vm854_vm1, %v851_v32, %v853_v37  ;;  %v855_v26 = vsel %vm854_vm1, %v847_v25, %v849_v30  ;;  %v1120_v30 = vsub.s32 %v1117_v11, %v1088_v41 }
 0x1d9   : > { %1969 = vmatpush3.msra.mxu1 %v857_v39 }
 0x1da   : > { %939 = vmatpush1.msra.mxu0 %v855_v26  ;;  %1971 = vmatmul.mubr.msk.f32.vlgmr.msra.gmra.mrb[0].mxu1 %vm912_vm2, %v864_v38 }
 0x1db   : > { %1892 = vmatmul.mubr.msk.f32.vlgmr.msra.gmra.mrb[0].mxu0 %vm912_vm2, %v864_v38  ;;  %1973 = vmatprep.mubr.msk.f32.mxu1 %vm2590_vm9, %v2568_v0 }
 0x1dc   : > { %992 = vmatprep.mubr.f32.mxu0 %v2568_v0  ;;  %2082 = vmatprep.subr.bf16.mxu1 %v2587_v3 }
 0x1de   : > { %1974 = vmatmul.mubr.msk.f32.gmra.mrb[2].mxu1 %vm912_vm2, %v865_v31 }
 0x1df   : > { %1893 = vmatmul.mubr.msk.f32.gmra.mrb[2].mxu0 %vm912_vm2, %v865_v31  ;;  %1976 = vmatprep.mubr.msk.f32.mxu1 %vm2590_vm9, %v2568_v0 }
 0x1e0   : > { %998 = vmatprep.mubr.f32.mxu0 %v2568_v0 }
 0x1e2   : > { %1977 = vmatmul.mubr.msk.f32.gmra.mrb[4].mxu1 %vm912_vm2, %v866_v23 }
 0x1e3   : > { %1894 = vmatmul.mubr.msk.f32.gmra.mrb[4].mxu0 %vm912_vm2, %v866_v23  ;;  %2003 = vmatprep.mubr.msk.f32.mxu1 %vm2590_vm9, %v2568_v0 }
 0x1e4   : > { %1547 = vmatprep.mubr.f32.mxu0 %v2568_v0 }
 0x1e8   : > { %v900_v60 = vpop.permute.xlu0 %899  ;;  %v905_v10 = vpop.permute.xlu1 %904 }
 0x1ec   : > { %v910_v5 = vpop.permute.xlu1 %909  ;;  %v2286_v40 = vpop.permute.xlu0 %2285 }
 0x1f0   : > { %v3287_v41 = vpop.permute.xlu0 %2290 }
 0x2ad   : > { %v1071_v45 = vpop.f32.mrb[0].mxu1 }
 0x2ae   : > { %v1072_v46 = vadd.f32 %v1071_v45, %v900_v60  ;;  %v988_v47 = vpop.f32.mrb[0].mxu0  ;;  %v1972_v48 = vpop.f32.mrb[1].mxu1 }
 0x2af   : > { %v989_v24 = vadd.f32 %v988_v47, %v900_v60  ;;  %v990_v16 = vpop.f32.mrb[1].mxu0  ;;  %v2287_v47 = vunpack.i.l.bf16 %v2286_v40 }
 0x2b0   : > { %v3222_v50 = vmul.f32 %v1098_v44, %v1072_v46  ;;  %v991_v8 = vadd.f32 %v990_v16, %v900_v60  ;;  %v2288_v46 = vunpack.i.h.bf16 %v2286_v40 }
 0x2b1   : > { %v3224_v9 = vmul.f32 %v1090_v1, %v989_v24  ;;  %v1076_v51 = vpop.f32.mrb[2].mxu1 }
 0x2b2   : > { %v3226_v55 = vmul.f32 %v1094_v49, %v991_v8  ;;  %v1077_v57 = vadd.f32 %v1076_v51, %v905_v10  ;;  %v994_v58 = vpop.f32.mrb[2].mxu0  ;;  %v1975_v59 = vpop.f32.mrb[3].mxu1  ;;  %v2294_v15 = vpack.i.bf16 %v3222_v50, %v2568_v0 }
 0x2b3   : > { %v995_v61 = vadd.f32 %v994_v58, %v905_v10  ;;  %v996_v62 = vpop.f32.mrb[3].mxu0 }
 0x2b4   : > { %v3230_v63 = vmul.f32 %v1098_v44, %v1077_v57  ;;  %v997_v2 = vadd.f32 %v996_v62, %v905_v10  ;;  %2295 = vrot.lane.b32.xlu1 %v2294_v15, %s2593_s26  ;;  %v2304_v4 = vpack.i.bf16 %v3226_v55, %v3224_v9 }
 0x2b5   : > { %v3235_v6 = vmul.f32 %v1090_v1, %v995_v61  ;;  %v1081_v7 = vpop.f32.mrb[4].mxu1 }
 0x2b6   : > { %v3238_v12 = vmul.f32 %v1094_v49, %v997_v2  ;;  %v1082_v13 = vadd.f32 %v1081_v7, %v910_v5  ;;  %v1000_v14 = vpop.f32.mrb[4].mxu0  ;;  %2305 = vrot.lane.b32.xlu0 %v2304_v4, %s2570_s27  ;;  %v2299_v17 = vpack.i.bf16 %v3230_v63, %v3222_v50  ;;  %v1978_v18 = vpop.f32.mrb[5].mxu1 }
 0x2b7   : > { %v1001_v20 = vadd.f32 %v1000_v14, %v910_v5  ;;  %v1002_v22 = vpop.f32.mrb[5].mxu0 }
 0x2b8   : > { %v3243_v27 = vmul.f32 %v1098_v44, %v1082_v13  ;;  %v1003_v28 = vadd.f32 %v1002_v22, %v910_v5  ;;  %2300 = vrot.lane.b32.xlu1 %v2299_v17, %s2570_s27  ;;  %v2319_v29 = vpack.i.bf16 %v3238_v12, %v3235_v6 }
 0x2b9   : > { %v3248_v32 = vmul.f32 %v1090_v1, %v1001_v20  ;;  %v2292_v20 = vunpack.i.l.bf16 %v3287_v41 }
 0x2ba   : > { %v3255_v33 = vmul.f32 %v1094_v49, %v1003_v28  ;;  %v2314_v21 = vpack.i.bf16 %v3243_v27, %v3257_v19  ;;  %v2324_v34 = vpack.i.bf16 %v3243_v27, %v3230_v63  ;;  %v2098_v36 = vpack.c.bf16 %v3243_v27, %v3230_v63  ;;  %v1414_v63 = vld [vmem:[#allocation13 + $0x20] sm:$0xff] }
 0x2bb   : > { %v2080_v35 = vpack.c.bf16 %v3248_v32, %v3235_v6  ;;  %v1128_v39 = vrot.slane %v3243_v27, %v1120_v30  ;;  %v1415_v6 = vld [vmem:[#allocation13 + $0x28] sm:$0xff]  ;;  %v1417_v27 = vld [vmem:[#allocation13 + $0x38] sm:$0xff] }
 0x2bc   : > { %v1114_v25 = vcombine.low %v3248_v32, %v3255_v33  ;;  %2310 = vrot.lane.b32.xlu1 %v2304_v4, %s2593_s26  ;;  %2315 = vrot.lane.b32.xlu0 %v2314_v21, %s2570_s27  ;;  %v2334_v37 = vpack.i.bf16 %v3255_v33, %v3248_v32  ;;  %v2078_v38 = vpack.c.bf16 %v3255_v33, %v3238_v12  ;;  %v1416_v12 = vld [vmem:[#allocation13 + $0x30] sm:$0xff]  ;;  %v1418_v32 = vld [vmem:[#allocation13 + $0x40] sm:$0xff] }
 0x2be   : > { %v1121_v26 = vrot.slane %v1114_v25, %v1120_v30 }
 0x2c0   : > { %v1129_v31 = vcombine.low %v1121_v26, %v1128_v39  ;;  %2320 = vrot.lane.b32.xlu1 %v2319_v29, %s2570_s27  ;;  %2330 = vrot.lane.b32.xlu0 %v2319_v29, %s2593_s26 }
 0x2c2   : > { %v1136_v23 = vrot.slane %v1129_v31, %v1120_v30  ;;  %v2293_v30 = vunpack.i.h.bf16 %v3287_v41 }
 0x2c4   : > { %1142 = vst.msk [vmem:[%s333_s24] sm:$0x7] %vm1140_vm3, %v1136_v23  ;;  %2325 = vrot.lane.b32.xlu1 %v2324_v34, %s2593_s26  ;;  %2335 = vrot.lane.b32.xlu0 %v2334_v37, %s2570_s27  ;;  %s2101_s27 = smul.u32 216, %s3449_s25 }
 0x2c6   : > { %s3381_s15 = scalar_lea.vmem %s3429_s6, %s2101_s27 }
 0x2c8   : > { %2345 = vrot.lane.b32.xlu1 %v2334_v37, %s2593_s26  ;;  %2340 = vrot.lane.b32.xlu0 %v2304_v4, %s2595_s30 }
 0x2cc   : > { %2350 = vrot.lane.b32.xlu1 %v2319_v29, %s2595_s30  ;;  %2355 = vrot.lane.b32.xlu0 %v2568_v0, %s2595_s30 }
 0x2d0   : > { %2360 = vrot.lane.b32.xlu1 %v2299_v17, %s2595_s30  ;;  %2365 = vrot.lane.b32.xlu0 %v2334_v37, %s2595_s30 }
 0x2d4   : > { %2370 = vrot.lane.b32.xlu1 %v2314_v21, %s2595_s30 }
 0x326   : > { %v2296_v52 = vpop.permute.xlu1 %2295 }
 0x327   : > { %v2298_v48 = vunpack.i.h.bf16 %v2296_v52  ;;  %v2297_v10 = vunpack.i.l.bf16 %v2296_v52 }
 0x328   : > { %v2306_v42 = vpop.permute.xlu0 %2305 }
 0x329   : > { %v2308_v44 = vunpack.i.h.bf16 %v2306_v42  ;;  %v2307_v45 = vunpack.i.l.bf16 %v2306_v42 }
 0x32a   : > { %v2301_v43 = vpop.permute.xlu1 %2300 }
 0x32b   : > { %v2302_v1 = vunpack.i.l.bf16 %v2301_v43  ;;  %v2303_v24 = vunpack.i.h.bf16 %v2301_v43  ;;  %v1213_v51 = vsel %vm1212_vm4, %v2287_v47, %v2307_v45  ;;  %v1214_v57 = vsel %vm1212_vm4, %v2307_v45, %v2308_v44 }
 0x32d   : > { %v1215_v53 = vsel %vm1212_vm4, %v2308_v44, %v2302_v1 }
 0x32e   : > { %v2311_v56 = vpop.permute.xlu1 %2310  ;;  %v2316_v60 = vpop.permute.xlu0 %2315 }
 0x32f   : > { %v2313_v54 = vunpack.i.h.bf16 %v2311_v56  ;;  %v2312_v58 = vunpack.i.l.bf16 %v2311_v56  ;;  %v2318_v13 = vunpack.i.h.bf16 %v2316_v60  ;;  %v2317_v14 = vunpack.i.l.bf16 %v2316_v60 }
 0x331   : > { %v1291_v22 = vsel %vm1288_vm5, %v2313_v54, %v2298_v48  ;;  %v1289_v21 = vsel %vm1288_vm5, %v2297_v10, %v2312_v58  ;;  %v1290_v40 = vsel %vm1288_vm5, %v2312_v58, %v2313_v54 }
 0x332   : > { %v2321_v0 = vpop.permute.xlu1 %2320  ;;  %v2331_v49 = vpop.permute.xlu0 %2330 }
 0x333   : > { %v2323_v16 = vunpack.i.h.bf16 %v2321_v0  ;;  %v2322_v8 = vunpack.i.l.bf16 %v2321_v0  ;;  %v2332_v4 = vunpack.i.l.bf16 %v2331_v49  ;;  %v2333_v28 = vunpack.i.h.bf16 %v2331_v49 }
 0x335   : > { %v1218_v59 = vsel %vm1212_vm4, %v2323_v16, %v2303_v24  ;;  %v1216_v15 = vsel %vm1212_vm4, %v2288_v46, %v2322_v8  ;;  %v1217_v61 = vsel %vm1212_vm4, %v2322_v8, %v2323_v16  ;;  %v1292_v37 = vsel %vm1288_vm5, %v2292_v20, %v2332_v4 }
 0x336   : > { %v2060_v62 = vpack.c.bf16 %v1216_v15, %v1213_v51  ;;  %v2083_v2 = vpack.c.bf16 %v1218_v59, %v1215_v53  ;;  %v2326_v5 = vpop.permute.xlu1 %2325  ;;  %v2336_v7 = vpop.permute.xlu0 %2335  ;;  %v2058_v11 = vpack.c.bf16 %v1217_v61, %v1214_v57  ;;  %v1293_v45 = vsel %vm1288_vm5, %v2332_v4, %v2333_v28 }
 0x337   : > { %v2338_v17 = vunpack.i.h.bf16 %v2336_v7  ;;  %v2337_v18 = vunpack.i.l.bf16 %v2336_v7  ;;  %v2327_v29 = vunpack.i.l.bf16 %v2326_v5  ;;  %v2328_v52 = vunpack.i.h.bf16 %v2326_v5 }
 0x338   : > { %2059 = vmatprep.subr.bf16.mxu0 %v2058_v11  ;;  %2084 = vmatpush3.bf16.msra.mxu1 %v2083_v2 }
 0x339   : > { %v1219_v34 = vsel %vm1212_vm4, %v2317_v14, %v2337_v18  ;;  %v1221_v25 = vsel %vm1212_vm4, %v2338_v17, %v2318_v13  ;;  %2061 = vmatpush1.bf16.msra.mxu0 %v2060_v62  ;;  %2085 = vmatprep.subr.bf16.mxu1 %v2587_v3  ;;  %v1220_v23 = vsel %vm1212_vm4, %v2337_v18, %v2338_v17 }
 0x33a   : > { %v2086_v39 = vpack.c.bf16 %v1291_v22, %v1221_v25  ;;  %v2346_v26 = vpop.permute.xlu1 %2345  ;;  %v2341_v31 = vpop.permute.xlu0 %2340  ;;  %v2064_v41 = vpack.c.bf16 %v1289_v21, %v1219_v34  ;;  %v1294_v56 = vsel %vm1288_vm5, %v2333_v28, %v2327_v29  ;;  %v2062_v44 = vpack.c.bf16 %v1290_v40, %v1220_v23 }
 0x33b   : > { %v2348_v42 = vunpack.i.h.bf16 %v2346_v26  ;;  %v2347_v43 = vunpack.i.l.bf16 %v2346_v26  ;;  %v2343_v60 = vunpack.i.h.bf16 %v2341_v31  ;;  %v2342_v47 = vunpack.i.l.bf16 %v2341_v31 }
 0x33c   : > { %2087 = vmatpush3.bf16.msra.mxu1 %v2086_v39  ;;  %2063 = vmatprep.subr.bf16.mxu0 %v2062_v44 }
 0x33d   : > { %v1295_v1 = vsel %vm1288_vm5, %v2293_v30, %v2347_v43  ;;  %v1297_v46 = vsel %vm1288_vm5, %v2348_v42, %v2328_v52  ;;  %2088 = vmatprep.subr.bf16.mxu1 %v2587_v3  ;;  %v1296_v48 = vsel %vm1288_vm5, %v2347_v43, %v2348_v42  ;;  %2065 = vmatpush1.bf16.msra.mxu0 %v2064_v41 }
 0x33e   : > { %v2068_v0 = vpack.c.bf16 %v1295_v1, %v1292_v37  ;;  %v2089_v49 = vpack.c.bf16 %v1297_v46, %v1294_v56  ;;  %v2351_v10 = vpop.permute.xlu1 %2350  ;;  %v2356_v24 = vpop.permute.xlu0 %2355  ;;  %v2066_v16 = vpack.c.bf16 %v1296_v48, %v1293_v45  ;;  %v1366_v59 = vsel %vm1364_vm6, %v2342_v47, %v2343_v60 }
 0x33f   : > { %v2353_v8 = vunpack.i.h.bf16 %v2351_v10  ;;  %v2352_v51 = vunpack.i.l.bf16 %v2351_v10  ;;  %v2358_v53 = vunpack.i.h.bf16 %v2356_v24  ;;  %v2357_v54 = vunpack.i.l.bf16 %v2356_v24 }
 0x340   : > { %2067 = vmatprep.subr.bf16.mxu0 %v2066_v16  ;;  %2090 = vmatpush3.bf16.msra.mxu1 %v2089_v49 }
 0x341   : > { %v1368_v57 = vsel %vm1364_vm6, %v2358_v53, %v2352_v51  ;;  %v1365_v58 = vsel %vm1364_vm6, %v2357_v54, %v2342_v47  ;;  %v1369_v15 = vsel %vm1364_vm6, %v2352_v51, %v2353_v8  ;;  %2091 = vmatprep.subr.bf16.mxu1 %v2587_v3  ;;  %2069 = vmatpush1.bf16.msra.mxu0 %v2068_v0 }
 0x342   : > { %v2072_v61 = vpack.c.bf16 %v1368_v57, %v1365_v58  ;;  %v2361_v62 = vpop.permute.xlu1 %2360  ;;  %v2366_v2 = vpop.permute.xlu0 %2365  ;;  %v2070_v4 = vpack.c.bf16 %v1369_v15, %v1366_v59 }
 0x343   : > { %v2363_v5 = vunpack.i.h.bf16 %v2361_v62  ;;  %v2362_v7 = vunpack.i.l.bf16 %v2361_v62  ;;  %v2368_v11 = vunpack.i.h.bf16 %v2366_v2  ;;  %v2367_v13 = vunpack.i.l.bf16 %v2366_v2 }
 0x344   : > { %2071 = vmatprep.subr.bf16.mxu0 %v2070_v4 }
 0x345   : > { %v1367_v14 = vsel %vm1364_vm6, %v2343_v60, %v2362_v7  ;;  %v1370_v17 = vsel %vm1364_vm6, %v2353_v8, %v2363_v5  ;;  %v1372_v18 = vsel %vm1364_vm6, %v2367_v13, %v2368_v11  ;;  %2073 = vmatpush1.bf16.msra.mxu0 %v2072_v61 }
 0x346   : > { %v2092_v20 = vpack.c.bf16 %v1370_v17, %v1367_v14  ;;  %v2371_v22 = vpop.permute.xlu1 %2370  ;;  %v2074_v28 = vpack.c.bf16 %v3226_v55, %v1372_v18  ;;  %v1410_v55 = vld [vmem:[#allocation13] sm:$0xff] }
 0x347   : > { %v2373_v29 = vunpack.i.h.bf16 %v2371_v22  ;;  %v2372_v30 = vunpack.i.l.bf16 %v2371_v22 }
 0x348   : > { %2075 = vmatprep.subr.bf16.mxu0 %v2074_v28  ;;  %2093 = vmatpush3.bf16.msra.mxu1 %v2092_v20 }
 0x349   : > { %v1371_v21 = vsel %vm1364_vm6, %v2372_v30, %v2367_v13  ;;  %v1373_v34 = vsel %vm1364_vm6, %v2368_v11, %v2373_v29  ;;  %2094 = vmatprep.subr.bf16.mxu1 %v2587_v3 }
 0x34a   : > { %v2076_v25 = vpack.c.bf16 %v3224_v9, %v1371_v21  ;;  %v2095_v37 = vpack.c.bf16 %v3222_v50, %v1373_v34  ;;  %v1412_v50 = vld [vmem:[#allocation13 + $0x10] sm:$0xff]  ;;  %v1413_v9 = vld [vmem:[#allocation13 + $0x18] sm:$0xff] }
 0x34c   : > { %2077 = vmatpush1.bf16.msra.mxu0 %v2076_v25  ;;  %2096 = vmatpush3.bf16.msra.mxu1 %v2095_v37 }
 0x34d   : > { %2079 = vmatprep.subr.bf16.mxu0 %v2078_v38  ;;  %2097 = vmatprep.subr.bf16.mxu1 %v2587_v3  ;;  %v1411_v3 = vld [vmem:[#allocation13 + $0x8] sm:$0xff] }
 0x350   : > { %2081 = vmatpush1.bf16.msra.mxu0 %v2080_v35  ;;  %2099 = vmatpush3.bf16.msra.mxu1 %v2098_v36 }
 0x353   : > { %1898 = vmatmul.mubr.msk.f32.vlgmr.msra.gmra.mrb[6].mxu0 %vm1455_vm7, %v1410_v55  ;;  %2004 = vmatmul.mubr.msk.f32.vlgmr.msra.gmra.mrb[6].mxu1 %vm1455_vm7, %v1410_v55 }
 0x354   : > { %1553 = vmatprep.mubr.f32.mxu0 %v3257_v19  ;;  %2006 = vmatprep.mubr.msk.f32.mxu1 %vm2590_vm9, %v3257_v19 }
 0x357   : > { %1899 = vmatmul.mubr.msk.f32.gmra.mrb[8].mxu0 %vm1455_vm7, %v1411_v3  ;;  %2007 = vmatmul.mubr.msk.f32.gmra.mrb[8].mxu1 %vm1455_vm7, %v1411_v3 }
 0x358   : > { %1559 = vmatprep.mubr.f32.mxu0 %v3257_v19  ;;  %2009 = vmatprep.mubr.msk.f32.mxu1 %vm2590_vm9, %v3257_v19 }
 0x35b   : > { %1900 = vmatmul.mubr.msk.f32.gmra.mrb[10].mxu0 %vm1455_vm7, %v1412_v50  ;;  %2010 = vmatmul.mubr.msk.f32.gmra.mrb[10].mxu1 %vm1455_vm7, %v1412_v50 }
 0x35c   : > { %1565 = vmatprep.mubr.f32.mxu0 %v3257_v19  ;;  %2012 = vmatprep.mubr.msk.f32.mxu1 %vm2590_vm9, %v3257_v19 }
 0x35f   : > { %1901 = vmatmul.mubr.msk.f32.gmra.mrb[12].mxu0 %vm1455_vm7, %v1413_v9  ;;  %2013 = vmatmul.mubr.msk.f32.gmra.mrb[12].mxu1 %vm1455_vm7, %v1413_v9 }
 0x360   : > { %1571 = vmatprep.mubr.f32.mxu0 %v3257_v19  ;;  %2015 = vmatprep.mubr.msk.f32.mxu1 %vm2590_vm9, %v3257_v19 }
 0x363   : > { %1902 = vmatmul.mubr.msk.f32.gmra.mrb[14].mxu0 %vm1455_vm7, %v1414_v63  ;;  %2016 = vmatmul.mubr.msk.f32.gmra.mrb[14].mxu1 %vm1455_vm7, %v1414_v63 }
 0x364   : > { %1577 = vmatprep.mubr.f32.mxu0 %v3257_v19  ;;  %2018 = vmatprep.mubr.msk.f32.mxu1 %vm2590_vm9, %v3257_v19 }
 0x367   : > { %1903 = vmatmul.mubr.msk.f32.gmra.mrb[16].mxu0 %vm1455_vm7, %v1415_v6  ;;  %2019 = vmatmul.mubr.msk.f32.gmra.mrb[16].mxu1 %vm1455_vm7, %v1415_v6 }
 0x368   : > { %1583 = vmatprep.mubr.f32.mxu0 %v3257_v19  ;;  %2021 = vmatprep.mubr.msk.f32.mxu1 %vm2590_vm9, %v3257_v19 }
 0x36b   : > { %1904 = vmatmul.mubr.msk.f32.gmra.mrb[18].mxu0 %vm1455_vm7, %v1416_v12  ;;  %2022 = vmatmul.mubr.msk.f32.gmra.mrb[18].mxu1 %vm1455_vm7, %v1416_v12 }
 0x36c   : > { %1589 = vmatprep.mubr.f32.mxu0 %v3257_v19  ;;  %2024 = vmatprep.mubr.msk.f32.mxu1 %vm2590_vm9, %v3257_v19 }
 0x36f   : > { %1905 = vmatmul.mubr.msk.f32.gmra.mrb[20].mxu0 %vm1455_vm7, %v1417_v27  ;;  %2025 = vmatmul.mubr.msk.f32.gmra.mrb[20].mxu1 %vm1455_vm7, %v1417_v27 }
 0x370   : > { %1595 = vmatprep.mubr.f32.mxu0 %v3257_v19  ;;  %2027 = vmatprep.mubr.msk.f32.mxu1 %vm2590_vm9, %v3257_v19 }
 0x373   : > { %1906 = vmatmul.mubr.msk.f32.gmra.mrb[22].mxu0 %vm1455_vm7, %v1418_v32  ;;  %2028 = vmatmul.mubr.msk.f32.gmra.mrb[22].mxu1 %vm1455_vm7, %v1418_v32 }
 0x426   : > { %v1549_v33 = vpop.f32.mrb[6].mxu0  ;;  %v1668_v19 = vpop.f32.mrb[6].mxu1 }
 0x427   : > { %1712 = vst [vmem:[%s3381_s15] sm:$0xff] %v1549_v33  ;;  %1714 = vst [vmem:[%s3381_s15 + $0x10] sm:$0xff] %v1668_v19  ;;  %v1551_v35 = vpop.f32.mrb[7].mxu0  ;;  %v2005_v36 = vpop.f32.mrb[7].mxu1 }
 0x428   : > { %1713 = vst [vmem:[%s3381_s15 + $0x8] sm:$0xff] %v1551_v35 }
 0x42a   : > { %v1555_v38 = vpop.f32.mrb[8].mxu0  ;;  %v1673_v39 = vpop.f32.mrb[8].mxu1 }
 0x42b   : > { %1715 = vst [vmem:[%s3381_s15 + $0x18] sm:$0xff] %v1555_v38  ;;  %1717 = vst [vmem:[%s3381_s15 + $0x28] sm:$0xff] %v1673_v39  ;;  %v1557_v26 = vpop.f32.mrb[9].mxu0  ;;  %v2008_v31 = vpop.f32.mrb[9].mxu1 }
 0x42c   : > { %1716 = vst [vmem:[%s3381_s15 + $0x20] sm:$0xff] %v1557_v26 }
 0x42e   : > { %v1561_v23 = vpop.f32.mrb[10].mxu0  ;;  %v1678_v40 = vpop.f32.mrb[10].mxu1 }
 0x42f   : > { %1718 = vst [vmem:[%s3381_s15 + $0x30] sm:$0xff] %v1561_v23  ;;  %1720 = vst [vmem:[%s3381_s15 + $0x40] sm:$0xff] %v1678_v40  ;;  %v1563_v52 = vpop.f32.mrb[11].mxu0  ;;  %v2011_v41 = vpop.f32.mrb[11].mxu1 }
 0x430   : > { %1719 = vst [vmem:[%s3381_s15 + $0x38] sm:$0xff] %v1563_v52 }
 0x432   : > { %v1567_v42 = vpop.f32.mrb[12].mxu0  ;;  %v1683_v43 = vpop.f32.mrb[12].mxu1 }
 0x433   : > { %1721 = vst [vmem:[%s3381_s15 + $0x48] sm:$0xff] %v1567_v42  ;;  %1723 = vst [vmem:[%s3381_s15 + $0x58] sm:$0xff] %v1683_v43  ;;  %v1569_v56 = vpop.f32.mrb[13].mxu0  ;;  %v2014_v60 = vpop.f32.mrb[13].mxu1 }
 0x434   : > { %1722 = vst [vmem:[%s3381_s15 + $0x50] sm:$0xff] %v1569_v56 }
 0x436   : > { %v1573_v44 = vpop.f32.mrb[14].mxu0  ;;  %v1688_v45 = vpop.f32.mrb[14].mxu1 }
 0x437   : > { %1724 = vst [vmem:[%s3381_s15 + $0x60] sm:$0xff] %v1573_v44  ;;  %1726 = vst [vmem:[%s3381_s15 + $0x70] sm:$0xff] %v1688_v45  ;;  %v1575_v1 = vpop.f32.mrb[15].mxu0  ;;  %v2017_v46 = vpop.f32.mrb[15].mxu1 }
 0x438   : > { %1725 = vst [vmem:[%s3381_s15 + $0x68] sm:$0xff] %v1575_v1 }
 0x43a   : > { %v1579_v47 = vpop.f32.mrb[16].mxu0  ;;  %v1693_v48 = vpop.f32.mrb[16].mxu1 }
 0x43b   : > { %1727 = vst [vmem:[%s3381_s15 + $0x78] sm:$0xff] %v1579_v47  ;;  %1729 = vst [vmem:[%s3381_s15 + $0x88] sm:$0xff] %v1693_v48  ;;  %v1581_v0 = vpop.f32.mrb[17].mxu0  ;;  %v2020_v49 = vpop.f32.mrb[17].mxu1 }
 0x43c   : > { %1728 = vst [vmem:[%s3381_s15 + $0x80] sm:$0xff] %v1581_v0 }
 0x43e   : > { %v1585_v10 = vpop.f32.mrb[18].mxu0  ;;  %v1698_v24 = vpop.f32.mrb[18].mxu1 }
 0x43f   : > { %1730 = vst [vmem:[%s3381_s15 + $0x90] sm:$0xff] %v1585_v10  ;;  %1732 = vst [vmem:[%s3381_s15 + $0xa0] sm:$0xff] %v1698_v24  ;;  %v1587_v16 = vpop.f32.mrb[19].mxu0  ;;  %v2023_v8 = vpop.f32.mrb[19].mxu1 }
 0x440   : > { %1731 = vst [vmem:[%s3381_s15 + $0x98] sm:$0xff] %v1587_v16 }
 0x442   : > { %v1591_v51 = vpop.f32.mrb[20].mxu0  ;;  %v1703_v53 = vpop.f32.mrb[20].mxu1 }
 0x443   : > { %1733 = vst [vmem:[%s3381_s15 + $0xa8] sm:$0xff] %v1591_v51  ;;  %1735 = vst [vmem:[%s3381_s15 + $0xb8] sm:$0xff] %v1703_v53  ;;  %v1593_v54 = vpop.f32.mrb[21].mxu0  ;;  %v2026_v57 = vpop.f32.mrb[21].mxu1 }
 0x444   : > { %1734 = vst [vmem:[%s3381_s15 + $0xb0] sm:$0xff] %v1593_v54 }
 0x446   : > { %v1597_v58 = vpop.f32.mrb[22].mxu0  ;;  %v1708_v59 = vpop.f32.mrb[22].mxu1 }
 0x447   : > { %1736 = vst [vmem:[%s3381_s15 + $0xc0] sm:$0xff] %v1597_v58  ;;  %1738 = vst [vmem:[%s3381_s15 + $0xd0] sm:$0xff] %v1708_v59  ;;  %v1599_v15 = vpop.f32.mrb[23].mxu0  ;;  %v2029_v61 = vpop.f32.mrb[23].mxu1 }
 0x448   : > { %1737 = vst [vmem:[%s3381_s15 + $0xc8] sm:$0xff] %v1599_v15 }
 0x449 PF: > { %p19_p10 = scmp.ge.s32.totalorder %s2772_s16, 4   ;;  %s3444_s21 = smov %s2551_s22 }
 0x44a   : > { %s3445_s22 = smov %s2555_s23  ;;  %s3446_s23 = smov %s2783_s29 }
 0x44b   : > { %s3447_s24 = smov %s2772_s16  ;;  %21 = sbr.rel (!%p19_p10) target bundleno = 5 (0x5), region = 108 }
 0x452   :  { %1774 = vsyncpa [#allocation7], 1 }
 0x453   :  { %1776 = vsyncpa [#allocation7 + $0x1], 1 }
 0x454   :  { %1777 = vsyncpa [#allocation9], 1 }
 0x455   :  { %1778 = vsyncpa [#allocation12], 1 }

</bundles_post_ra>
